<compile_context>
chip_gen: v7x
topology: tpu7x:2x2x1
jax: 0.10.0
libtpu: 0.0.40
codegen_flags: <defaults>
</compile_context>

<pallas_src>
import functools

import jax
import jax.numpy as jnp
from jax.experimental import pallas as pl
from jax.experimental.pallas import tpu as pltpu

# ----------------------------------------------------------------------------
# Problem sizes (VAE_3hl(latent_dims=4, layers=[10, 9, 8]))
# ----------------------------------------------------------------------------
IN_DIM = 11
LAYERS = [10, 9, 8]
LATENT = 4

P = 128          # padded feature width (lane-aligned K for every matmul)
NUM_MATS = 8     # 3 enc hidden + 1 fused (mu|sigma) head + 3 dec hidden + 1 dec out
TB_MAX = 128     # max batch rows per grid step (sweep 128-512 if desired)


def _round_up(n, m):
    return -(-n // m) * m


# ----------------------------------------------------------------------------
# Kernel
# ----------------------------------------------------------------------------
def _vae_kernel(xin_ref, w_ref, b_ref, out_ref, *, latent_dims, eps_off, recon_pad):
    """Full VAE_3hl forward for one (TB, P) batch tile.

    xin_ref: (TB, P) f32   fused input: x in lanes [0, in_dim), eps in
                           lanes [eps_off, eps_off + L)
    w_ref:   (8, P, P) bf16 pre-transposed, padded, head-fused weights
    b_ref:   (8, 1, P) f32  padded biases
    out_ref: (TB, recon_pad + 4L) f32 packed output:
             lanes [0, recon_pad)                      -> recon (real lanes 0:11)
             lanes [recon_pad, recon_pad+L)            -> z
             lanes [recon_pad+L, recon_pad+2L)         -> mu
             lanes [recon_pad+2L, recon_pad+3L)        -> sigma
             lanes [recon_pad+3L, recon_pad+4L)        -> per-row KL (broadcast)
    """
    f32 = jnp.float32
    tb, p = xin_ref.shape
    L = latent_dims

    def dense(h, i):
        # bf16 operands on the MXU, f32 accumulate, f32 bias add.
        return jnp.dot(h.astype(jnp.bfloat16), w_ref[i],
                       preferred_element_type=f32) + b_ref[i]

    xin = xin_ref[...]

    # ---- encoder: linear1..3 with ReLU (eps lanes hit zero weight rows) ------
    h = xin
    for i in range(3):
        h = jnp.maximum(dense(h, i), 0.0)

    # ---- fused mu/sigma head: one matmul, mu -> lanes [0,L), log-sigma [L,2L)
    head = dense(h, 3)
    mu = head[:, :L]                                 # (TB, L)
    sg_pre = head[:, L:2 * L]                        # (TB, L) log-sigma pre-act
    sigma = jnp.exp(sg_pre)                          # f32 EUP
    eps = xin[:, eps_off:eps_off + L]                # N(0,1) sample

    # reparameterization
    z = mu + sigma * eps

    # kl = sum(sigma^2 + mu^2 - log(sigma) - 1/2); log(exp(sg_pre)) == sg_pre
    kl_row = jnp.sum(sigma * sigma + mu * mu - sg_pre - 0.5,
                     axis=-1, keepdims=True)         # (TB, 1)

    # ---- decoder: widen z to the full lane width (pad lanes are exact zeros) -
    d = jnp.concatenate([z, jnp.zeros((tb, p - L), f32)], axis=1)
    for i in range(4, 7):
        d = jnp.maximum(dense(d, i), 0.0)
    recon = dense(d, 7)                              # nonzero only on lanes [0,11)

    # ---- pack everything into one lane-dense slab -----------------------------
    out_ref[...] = jnp.concatenate(
        [recon[:, :recon_pad], z, mu, sigma,
         jnp.broadcast_to(kl_row, (tb, L))], axis=1)


# ----------------------------------------------------------------------------
# One-time parameter packing (hoisted out of the per-call path)
# ----------------------------------------------------------------------------
def pack_params(weights, biases, *, latent_dims=LATENT):
    """Packs the 9 nn.Linear layers into device-resident padded stacks.

    weights/biases order: [enc1, enc2, enc3, enc_mu, enc_sigma, dec1, dec2,
    dec3, dec4]; weights are PyTorch-style (out, in), biases (out,).

    Returns:
      w_stack (8, P, P) bfloat16 — (in, out) layout, zero padded; mu/sigma heads
        fused into matrix 3 (mu -> lanes [0,L), sigma -> lanes [L,2L)).
      b_stack (8, 1, P) float32  — padded biases with the same head fusion.
    """
    def pad_wb(w, b):
        wt = jnp.asarray(w, jnp.float32).T
        wp = jnp.zeros((P, P), jnp.float32).at[:wt.shape[0], :wt.shape[1]].set(wt)
        bp = jnp.zeros((1, P), jnp.float32).at[0, :b.shape[0]].set(
            jnp.asarray(b, jnp.float32))
        return wp, bp

    w_list, b_list = [], []
    for i in range(3):                                   # encoder hidden layers
        wp, bp = pad_wb(weights[i], biases[i])
        w_list.append(wp); b_list.append(bp)

    # fused (mu | sigma) head
    w_mu = jnp.asarray(weights[3], jnp.float32).T        # (layers[2], L)
    w_sg = jnp.asarray(weights[4], jnp.float32).T
    wh = jnp.zeros((P, P), jnp.float32)
    wh = wh.at[:w_mu.shape[0], :latent_dims].set(w_mu)
    wh = wh.at[:w_sg.shape[0], latent_dims:2 * latent_dims].set(w_sg)
    bh = jnp.zeros((1, P), jnp.float32)
    bh = bh.at[0, :latent_dims].set(jnp.asarray(biases[3], jnp.float32))
    bh = bh.at[0, latent_dims:2 * latent_dims].set(jnp.asarray(biases[4], jnp.float32))
    w_list.append(wh); b_list.append(bh)

    for i in range(5, 9):                                # decoder layers
        wp, bp = pad_wb(weights[i], biases[i])
        w_list.append(wp); b_list.append(bp)

    w_stack = jnp.stack(w_list).astype(jnp.bfloat16)     # (8, P, P) bf16
    b_stack = jnp.stack(b_list)                          # (8, 1, P) f32
    return w_stack, b_stack


# ----------------------------------------------------------------------------
# Jitted per-call path
# ----------------------------------------------------------------------------
@functools.partial(jax.jit, static_argnames=("latent_dims", "in_dim"))
def vae_forward(w_stack, b_stack, x, eps, *, latent_dims=LATENT, in_dim=IN_DIM):
    """Runs the VAE_3hl forward. Returns (recon, z, mu, sigma, kl)."""
    b = x.shape[0]

    # ---- static batch-tile selection (pad the batch; keep >=2 tiles for v7x) -
    b8 = _round_up(b, 8)
    if b8 >= 2 * TB_MAX:
        tb = TB_MAX
    elif b8 >= 16:
        tb = _round_up(b8 // 2, 8)
    else:
        tb = 8
    b_pad = _round_up(b, tb)
    n_tiles = b_pad // tb

    recon_w = _round_up(in_dim, 8)            # 16: recon region in the packed out
    out_w = recon_w + 4 * latent_dims         # 32 packed output lanes
    eps_off = recon_w                         # eps lanes inside the fused input

    # single fused, padded input: x -> lanes [0,in_dim), eps -> [eps_off, eps_off+L)
    xin = jnp.zeros((b_pad, P), jnp.float32)
    xin = xin.at[:b, :in_dim].set(x.astype(jnp.float32))
    xin = xin.at[:b, eps_off:eps_off + latent_dims].set(eps.astype(jnp.float32))

    kernel = functools.partial(_vae_kernel, latent_dims=latent_dims,
                               eps_off=eps_off, recon_pad=recon_w)

    packed = pl.pallas_call(
        kernel,
        out_shape=jax.ShapeDtypeStruct((b_pad, out_w), jnp.float32),
        grid=(n_tiles,),
        in_specs=[
            pl.BlockSpec((tb, P), lambda i: (i, 0)),                 # fused x|eps
            pl.BlockSpec((NUM_MATS, P, P), lambda i: (0, 0, 0)),     # weights (resident)
            pl.BlockSpec((NUM_MATS, 1, P), lambda i: (0, 0, 0)),     # biases  (resident)
        ],
        out_specs=pl.BlockSpec((tb, out_w), lambda i: (i, 0)),
        compiler_params=pltpu.CompilerParams(
            dimension_semantics=("parallel",)),
    )(xin, w_stack, b_stack)

    recon = packed[:b, :in_dim]
    z = packed[:b, recon_w:recon_w + latent_dims]
    mu = packed[:b, recon_w + latent_dims:recon_w + 2 * latent_dims]
    sigma = packed[:b, recon_w + 2 * latent_dims:recon_w + 3 * latent_dims]
    kl = jnp.sum(packed[:b, recon_w + 3 * latent_dims])
    return recon, z, mu, sigma, kl


# ----------------------------------------------------------------------------
# References and parameter init
# ----------------------------------------------------------------------------
def _reference_forward(weights, biases, x, eps):
    """Pure-JAX f32 reference mirroring the PyTorch VAE_3hl forward."""
    h = x
    for i in range(3):
        h = jnp.maximum(h @ weights[i].T + biases[i], 0.0)
    mu = h @ weights[3].T + biases[3]
    sigma = jnp.exp(h @ weights[4].T + biases[4])
    z = mu + sigma * eps
    kl = jnp.sum(sigma ** 2 + mu ** 2 - jnp.log(sigma) - 0.5)
    d = z
    for i in range(5, 8):
        d = jnp.maximum(d @ weights[i].T + biases[i], 0.0)
    recon = d @ weights[8].T + biases[8]
    return recon, z, mu, sigma, kl


def _bf16_reference_forward(weights, biases, x, eps):
    """Reference using the same bf16-operand / f32-accumulate matmuls as the kernel."""
    def lin(h, i):
        return jnp.dot(h.astype(jnp.bfloat16),
                       weights[i].T.astype(jnp.bfloat16),
                       preferred_element_type=jnp.float32) + biases[i]
    h = x
    for i in range(3):
        h = jnp.maximum(lin(h, i), 0.0)
    mu = lin(h, 3)
    sg_pre = lin(h, 4)
    sigma = jnp.exp(sg_pre)
    z = mu + sigma * eps
    kl = jnp.sum(sigma ** 2 + mu ** 2 - sg_pre - 0.5)
    d = z
    for i in range(5, 8):
        d = jnp.maximum(lin(d, i), 0.0)
    recon = lin(d, 8)
    return recon, z, mu, sigma, kl


def _init_params(key, layers=LAYERS, latent_dims=LATENT, in_dim=IN_DIM):
    """Deterministic init mimicking nn.Linear default (uniform +/- 1/sqrt(fan_in))."""
    layer_io = [
        (in_dim, layers[0]), (layers[0], layers[1]), (layers[1], layers[2]),
        (layers[2], latent_dims), (layers[2], latent_dims),          # mu / sigma
        (latent_dims, layers[2]), (layers[2], layers[1]),
        (layers[1], layers[0]), (layers[0], in_dim),                 # decoder
    ]
    weights, biases = [], []
    for fan_in, fan_out in layer_io:
        key, kw, kb = jax.random.split(key, 3)
        bound = float(fan_in) ** -0.5
        w = jax.random.uniform(kw, (fan_out, fan_in), jnp.float32, -bound, bound)
        b = jax.random.uniform(kb, (fan_out,), jnp.float32, -bound, bound)
        weights.append(w)
        biases.append(b)
    return weights, biases


def _check(got, want, names, rtol, atol, tag):
    for g, w, n in zip(got, want, names):
        assert jnp.allclose(g, w, rtol=rtol, atol=atol), f"{n} mismatch ({tag})"


if __name__ == "__main__":
    key = jax.random.PRNGKey(0)
    key, kx, keps, kparams = jax.random.split(key, 4)

    # TODO(synk): torch.distributions.Normal sampling inside the encoder is
    # replaced by an explicit deterministic eps input (reparameterization noise).
    batch = 256                                            # -> 2 tiles of 128 rows
    x = jax.random.normal(kx, (batch, IN_DIM), jnp.float32)
    eps = jax.random.normal(keps, (batch, LATENT), jnp.float32)
    weights, biases = _init_params(kparams)

    # One-time packing (hoisted out of the per-call path).
    w_stack, b_stack = pack_params(weights, biases, latent_dims=LATENT)

    names = ("recon", "z", "mu", "sigma", "kl")

    out = vae_forward(w_stack, b_stack, x, eps, latent_dims=LATENT, in_dim=IN_DIM)
    jax.block_until_ready(out)

    # Tight check: reference with the same bf16-operand matmul math.
    _check(out, _bf16_reference_forward(weights, biases, x, eps),
           names, rtol=2e-3, atol=2e-3, tag="bf16 ref")
    # Loose check: full-f32 reference == original PyTorch module semantics
    # (bf16 matmul operands introduce ~1e-2-level error, hence relaxed tolerance).
    _check(out, _reference_forward(weights, biases, x, eps),
           names, rtol=1e-1, atol=1e-1, tag="f32 ref")

    # Ragged-batch path (batch not a tile multiple -> padded + sliced).
    xs, es = x[:10], eps[:10]
    out_s = vae_forward(w_stack, b_stack, xs, es, latent_dims=LATENT, in_dim=IN_DIM)
    jax.block_until_ready(out_s)
    _check(out_s, _bf16_reference_forward(weights, biases, xs, es),
           names, rtol=2e-3, atol=2e-3, tag="bf16 ref / ragged")

    print("KERNEL_OK")
</pallas_src>

<mosaic_0001>
module attributes {stable_mosaic.version = 11 : i64} {
  func.func @_vae_kernel(%arg0: i32, %arg1: memref<128x128xf32, #tpu.memory_space<vmem>>, %arg2: memref<8x128x128xbf16, #tpu.memory_space<vmem>>, %arg3: memref<8x1x128xf32, #tpu.memory_space<vmem>>, %arg4: memref<128x32xf32, #tpu.memory_space<vmem>>) attributes {dimension_semantics = [#tpu.dimension_semantics<parallel>], iteration_bounds = array<i64: 2>, scalar_prefetch = 0 : i64, scratch_operands = 0 : i64, tpu.core_type = #tpu.core_type<tc>, window_params = [{transform_indices = @transform_0, window_bounds = array<i64: 128, 128>}, {pipeline_mode = #tpu.pipeline_mode<synchronous>, transform_indices = @transform_1, window_bounds = array<i64: 8, 128, 128>}, {pipeline_mode = #tpu.pipeline_mode<synchronous>, transform_indices = @transform_2, window_bounds = array<i64: 8, 1, 128>}, {transform_indices = @transform_3, window_bounds = array<i64: 128, 32>}]} {
    %c0 = arith.constant 0 : index
    %c0_0 = arith.constant 0 : index
    %0 = vector.load %arg1[%c0, %c0_0] : memref<128x128xf32, #tpu.memory_space<vmem>>, vector<128x128xf32>
    %1 = arith.truncf %0 : vector<128x128xf32> to vector<128x128xbf16>
    %c0_1 = arith.constant 0 : index
    %c0_2 = arith.constant 0 : index
    %c0_3 = arith.constant 0 : index
    %2 = vector.load %arg2[%c0_1, %c0_2, %c0_3] : memref<8x128x128xbf16, #tpu.memory_space<vmem>>, vector<1x128x128xbf16>
    %3 = vector.shape_cast %2 : vector<1x128x128xbf16> to vector<128x128xbf16>
    %cst = arith.constant dense<0.000000e+00> : vector<128x128xf32>
    %4 = tpu.matmul %1, %3, %cst {dimension_numbers = #tpu.dot_dimension_numbers<[1], [0], [0], [1], [0, 0, 1, 1], [], []>} : vector<128x128xbf16>, vector<128x128xbf16>, vector<128x128xf32> -> vector<128x128xf32>
    %c0_4 = arith.constant 0 : index
    %c0_5 = arith.constant 0 : index
    %c0_6 = arith.constant 0 : index
    %5 = vector.load %arg3[%c0_4, %c0_5, %c0_6] : memref<8x1x128xf32, #tpu.memory_space<vmem>>, vector<1x1x128xf32>
    %6 = vector.shape_cast %5 : vector<1x1x128xf32> to vector<1x128xf32>
    %7 = vector.broadcast %6 : vector<1x128xf32> to vector<128x128xf32>
    %8 = arith.addf %4, %7 : vector<128x128xf32>
    %cst_7 = arith.constant 0.000000e+00 : f32
    %9 = vector.broadcast %cst_7 : f32 to vector<128x128xf32>
    %10 = arith.maximumf %8, %9 : vector<128x128xf32>
    %11 = arith.truncf %10 : vector<128x128xf32> to vector<128x128xbf16>
    %c1 = arith.constant 1 : index
    %c0_8 = arith.constant 0 : index
    %c0_9 = arith.constant 0 : index
    %12 = vector.load %arg2[%c1, %c0_8, %c0_9] : memref<8x128x128xbf16, #tpu.memory_space<vmem>>, vector<1x128x128xbf16>
    %13 = vector.shape_cast %12 : vector<1x128x128xbf16> to vector<128x128xbf16>
    %cst_10 = arith.constant dense<0.000000e+00> : vector<128x128xf32>
    %14 = tpu.matmul %11, %13, %cst_10 {dimension_numbers = #tpu.dot_dimension_numbers<[1], [0], [0], [1], [0, 0, 1, 1], [], []>} : vector<128x128xbf16>, vector<128x128xbf16>, vector<128x128xf32> -> vector<128x128xf32>
    %c1_11 = arith.constant 1 : index
    %c0_12 = arith.constant 0 : index
    %c0_13 = arith.constant 0 : index
    %15 = vector.load %arg3[%c1_11, %c0_12, %c0_13] : memref<8x1x128xf32, #tpu.memory_space<vmem>>, vector<1x1x128xf32>
    %16 = vector.shape_cast %15 : vector<1x1x128xf32> to vector<1x128xf32>
    %17 = vector.broadcast %16 : vector<1x128xf32> to vector<128x128xf32>
    %18 = arith.addf %14, %17 : vector<128x128xf32>
    %cst_14 = arith.constant 0.000000e+00 : f32
    %19 = vector.broadcast %cst_14 : f32 to vector<128x128xf32>
    %20 = arith.maximumf %18, %19 : vector<128x128xf32>
    %21 = arith.truncf %20 : vector<128x128xf32> to vector<128x128xbf16>
    %c2 = arith.constant 2 : index
    %c0_15 = arith.constant 0 : index
    %c0_16 = arith.constant 0 : index
    %22 = vector.load %arg2[%c2, %c0_15, %c0_16] : memref<8x128x128xbf16, #tpu.memory_space<vmem>>, vector<1x128x128xbf16>
    %23 = vector.shape_cast %22 : vector<1x128x128xbf16> to vector<128x128xbf16>
    %cst_17 = arith.constant dense<0.000000e+00> : vector<128x128xf32>
    %24 = tpu.matmul %21, %23, %cst_17 {dimension_numbers = #tpu.dot_dimension_numbers<[1], [0], [0], [1], [0, 0, 1, 1], [], []>} : vector<128x128xbf16>, vector<128x128xbf16>, vector<128x128xf32> -> vector<128x128xf32>
    %c2_18 = arith.constant 2 : index
    %c0_19 = arith.constant 0 : index
    %c0_20 = arith.constant 0 : index
    %25 = vector.load %arg3[%c2_18, %c0_19, %c0_20] : memref<8x1x128xf32, #tpu.memory_space<vmem>>, vector<1x1x128xf32>
    %26 = vector.shape_cast %25 : vector<1x1x128xf32> to vector<1x128xf32>
    %27 = vector.broadcast %26 : vector<1x128xf32> to vector<128x128xf32>
    %28 = arith.addf %24, %27 : vector<128x128xf32>
    %cst_21 = arith.constant 0.000000e+00 : f32
    %29 = vector.broadcast %cst_21 : f32 to vector<128x128xf32>
    %30 = arith.maximumf %28, %29 : vector<128x128xf32>
    %31 = arith.truncf %30 : vector<128x128xf32> to vector<128x128xbf16>
    %c3 = arith.constant 3 : index
    %c0_22 = arith.constant 0 : index
    %c0_23 = arith.constant 0 : index
    %32 = vector.load %arg2[%c3, %c0_22, %c0_23] : memref<8x128x128xbf16, #tpu.memory_space<vmem>>, vector<1x128x128xbf16>
    %33 = vector.shape_cast %32 : vector<1x128x128xbf16> to vector<128x128xbf16>
    %cst_24 = arith.constant dense<0.000000e+00> : vector<128x128xf32>
    %34 = tpu.matmul %31, %33, %cst_24 {dimension_numbers = #tpu.dot_dimension_numbers<[1], [0], [0], [1], [0, 0, 1, 1], [], []>} : vector<128x128xbf16>, vector<128x128xbf16>, vector<128x128xf32> -> vector<128x128xf32>
    %c3_25 = arith.constant 3 : index
    %c0_26 = arith.constant 0 : index
    %c0_27 = arith.constant 0 : index
    %35 = vector.load %arg3[%c3_25, %c0_26, %c0_27] : memref<8x1x128xf32, #tpu.memory_space<vmem>>, vector<1x1x128xf32>
    %36 = vector.shape_cast %35 : vector<1x1x128xf32> to vector<1x128xf32>
    %37 = vector.broadcast %36 : vector<1x128xf32> to vector<128x128xf32>
    %38 = arith.addf %34, %37 : vector<128x128xf32>
    %39 = vector.extract_strided_slice %38 {offsets = [0, 0], sizes = [128, 4], strides = [1, 1]} : vector<128x128xf32> to vector<128x4xf32>
    %40 = vector.extract_strided_slice %38 {offsets = [0, 4], sizes = [128, 4], strides = [1, 1]} : vector<128x128xf32> to vector<128x4xf32>
    %41 = math.exp %40 : vector<128x4xf32>
    %42 = vector.extract_strided_slice %0 {offsets = [0, 16], sizes = [128, 4], strides = [1, 1]} : vector<128x128xf32> to vector<128x4xf32>
    %43 = arith.mulf %41, %42 : vector<128x4xf32>
    %44 = arith.addf %39, %43 : vector<128x4xf32>
    %45 = arith.mulf %41, %41 : vector<128x4xf32>
    %46 = arith.mulf %39, %39 : vector<128x4xf32>
    %47 = arith.addf %45, %46 : vector<128x4xf32>
    %48 = arith.subf %47, %40 : vector<128x4xf32>
    %cst_28 = arith.constant 5.000000e-01 : f32
    %49 = vector.broadcast %cst_28 : f32 to vector<128x4xf32>
    %50 = arith.subf %48, %49 : vector<128x4xf32>
    %cst_29 = arith.constant dense<0.000000e+00> : vector<128xf32>
    %51 = vector.multi_reduction <add>, %50, %cst_29 [1] : vector<128x4xf32> to vector<128xf32>
    %52 = vector.shape_cast %51 : vector<128xf32> to vector<128x1xf32>
    %cst_30 = arith.constant 0.000000e+00 : f32
    %53 = vector.broadcast %cst_30 : f32 to vector<128x124xf32>
    %54 = tpu.concatenate %44, %53 in 1 : vector<128x4xf32>, vector<128x124xf32> -> vector<128x128xf32>
    %55 = arith.truncf %54 : vector<128x128xf32> to vector<128x128xbf16>
    %c4 = arith.constant 4 : index
    %c0_31 = arith.constant 0 : index
    %c0_32 = arith.constant 0 : index
    %56 = vector.load %arg2[%c4, %c0_31, %c0_32] : memref<8x128x128xbf16, #tpu.memory_space<vmem>>, vector<1x128x128xbf16>
    %57 = vector.shape_cast %56 : vector<1x128x128xbf16> to vector<128x128xbf16>
    %cst_33 = arith.constant dense<0.000000e+00> : vector<128x128xf32>
    %58 = tpu.matmul %55, %57, %cst_33 {dimension_numbers = #tpu.dot_dimension_numbers<[1], [0], [0], [1], [0, 0, 1, 1], [], []>} : vector<128x128xbf16>, vector<128x128xbf16>, vector<128x128xf32> -> vector<128x128xf32>
    %c4_34 = arith.constant 4 : index
    %c0_35 = arith.constant 0 : index
    %c0_36 = arith.constant 0 : index
    %59 = vector.load %arg3[%c4_34, %c0_35, %c0_36] : memref<8x1x128xf32, #tpu.memory_space<vmem>>, vector<1x1x128xf32>
    %60 = vector.shape_cast %59 : vector<1x1x128xf32> to vector<1x128xf32>
    %61 = vector.broadcast %60 : vector<1x128xf32> to vector<128x128xf32>
    %62 = arith.addf %58, %61 : vector<128x128xf32>
    %cst_37 = arith.constant 0.000000e+00 : f32
    %63 = vector.broadcast %cst_37 : f32 to vector<128x128xf32>
    %64 = arith.maximumf %62, %63 : vector<128x128xf32>
    %65 = arith.truncf %64 : vector<128x128xf32> to vector<128x128xbf16>
    %c5 = arith.constant 5 : index
    %c0_38 = arith.constant 0 : index
    %c0_39 = arith.constant 0 : index
    %66 = vector.load %arg2[%c5, %c0_38, %c0_39] : memref<8x128x128xbf16, #tpu.memory_space<vmem>>, vector<1x128x128xbf16>
    %67 = vector.shape_cast %66 : vector<1x128x128xbf16> to vector<128x128xbf16>
    %cst_40 = arith.constant dense<0.000000e+00> : vector<128x128xf32>
    %68 = tpu.matmul %65, %67, %cst_40 {dimension_numbers = #tpu.dot_dimension_numbers<[1], [0], [0], [1], [0, 0, 1, 1], [], []>} : vector<128x128xbf16>, vector<128x128xbf16>, vector<128x128xf32> -> vector<128x128xf32>
    %c5_41 = arith.constant 5 : index
    %c0_42 = arith.constant 0 : index
    %c0_43 = arith.constant 0 : index
    %69 = vector.load %arg3[%c5_41, %c0_42, %c0_43] : memref<8x1x128xf32, #tpu.memory_space<vmem>>, vector<1x1x128xf32>
    %70 = vector.shape_cast %69 : vector<1x1x128xf32> to vector<1x128xf32>
    %71 = vector.broadcast %70 : vector<1x128xf32> to vector<128x128xf32>
    %72 = arith.addf %68, %71 : vector<128x128xf32>
    %cst_44 = arith.constant 0.000000e+00 : f32
    %73 = vector.broadcast %cst_44 : f32 to vector<128x128xf32>
    %74 = arith.maximumf %72, %73 : vector<128x128xf32>
    %75 = arith.truncf %74 : vector<128x128xf32> to vector<128x128xbf16>
    %c6 = arith.constant 6 : index
    %c0_45 = arith.constant 0 : index
    %c0_46 = arith.constant 0 : index
    %76 = vector.load %arg2[%c6, %c0_45, %c0_46] : memref<8x128x128xbf16, #tpu.memory_space<vmem>>, vector<1x128x128xbf16>
    %77 = vector.shape_cast %76 : vector<1x128x128xbf16> to vector<128x128xbf16>
    %cst_47 = arith.constant dense<0.000000e+00> : vector<128x128xf32>
    %78 = tpu.matmul %75, %77, %cst_47 {dimension_numbers = #tpu.dot_dimension_numbers<[1], [0], [0], [1], [0, 0, 1, 1], [], []>} : vector<128x128xbf16>, vector<128x128xbf16>, vector<128x128xf32> -> vector<128x128xf32>
    %c6_48 = arith.constant 6 : index
    %c0_49 = arith.constant 0 : index
    %c0_50 = arith.constant 0 : index
    %79 = vector.load %arg3[%c6_48, %c0_49, %c0_50] : memref<8x1x128xf32, #tpu.memory_space<vmem>>, vector<1x1x128xf32>
    %80 = vector.shape_cast %79 : vector<1x1x128xf32> to vector<1x128xf32>
    %81 = vector.broadcast %80 : vector<1x128xf32> to vector<128x128xf32>
    %82 = arith.addf %78, %81 : vector<128x128xf32>
    %cst_51 = arith.constant 0.000000e+00 : f32
    %83 = vector.broadcast %cst_51 : f32 to vector<128x128xf32>
    %84 = arith.maximumf %82, %83 : vector<128x128xf32>
    %85 = arith.truncf %84 : vector<128x128xf32> to vector<128x128xbf16>
    %c7 = arith.constant 7 : index
    %c0_52 = arith.constant 0 : index
    %c0_53 = arith.constant 0 : index
    %86 = vector.load %arg2[%c7, %c0_52, %c0_53] : memref<8x128x128xbf16, #tpu.memory_space<vmem>>, vector<1x128x128xbf16>
    %87 = vector.shape_cast %86 : vector<1x128x128xbf16> to vector<128x128xbf16>
    %cst_54 = arith.constant dense<0.000000e+00> : vector<128x128xf32>
    %88 = tpu.matmul %85, %87, %cst_54 {dimension_numbers = #tpu.dot_dimension_numbers<[1], [0], [0], [1], [0, 0, 1, 1], [], []>} : vector<128x128xbf16>, vector<128x128xbf16>, vector<128x128xf32> -> vector<128x128xf32>
    %c7_55 = arith.constant 7 : index
    %c0_56 = arith.constant 0 : index
    %c0_57 = arith.constant 0 : index
    %89 = vector.load %arg3[%c7_55, %c0_56, %c0_57] : memref<8x1x128xf32, #tpu.memory_space<vmem>>, vector<1x1x128xf32>
    %90 = vector.shape_cast %89 : vector<1x1x128xf32> to vector<1x128xf32>
    %91 = vector.broadcast %90 : vector<1x128xf32> to vector<128x128xf32>
    %92 = arith.addf %88, %91 : vector<128x128xf32>
    %93 = vector.extract_strided_slice %92 {offsets = [0, 0], sizes = [128, 16], strides = [1, 1]} : vector<128x128xf32> to vector<128x16xf32>
    %94 = vector.shape_cast %52 : vector<128x1xf32> to vector<128x1xf32>
    %95 = vector.broadcast %94 : vector<128x1xf32> to vector<128x4xf32>
    %96 = tpu.concatenate %93, %44, %39, %41, %95 in 1 : vector<128x16xf32>, vector<128x4xf32>, vector<128x4xf32>, vector<128x4xf32>, vector<128x4xf32> -> vector<128x32xf32>
    %c0_58 = arith.constant 0 : index
    %c0_59 = arith.constant 0 : index
    %97 = vector.load %arg4[%c0_58, %c0_59] : memref<128x32xf32, #tpu.memory_space<vmem>>, vector<128x32xf32>
    tpu.vector_store %arg4[%c0_58, %c0_59], %96 {strides = array<i32>} : memref<128x32xf32, #tpu.memory_space<vmem>>, vector<128x32xf32>,
    return
  }
  func.func @transform_0(%arg0: i32) -> (i32, i32) {
    %c0_i32 = arith.constant 0 : i32
    %c0_i32_0 = arith.constant 0 : i32
    return %arg0, %c0_i32 : i32, i32
  }
  func.func @transform_1(%arg0: i32) -> (i32, i32, i32) {
    %c0_i32 = arith.constant 0 : i32
    %c0_i32_0 = arith.constant 0 : i32
    %c0_i32_1 = arith.constant 0 : i32
    %c0_i32_2 = arith.constant 0 : i32
    return %c0_i32, %c0_i32_0, %c0_i32_1 : i32, i32, i32
  }
  func.func @transform_2(%arg0: i32) -> (i32, i32, i32) {
    %c0_i32 = arith.constant 0 : i32
    %c0_i32_0 = arith.constant 0 : i32
    %c0_i32_1 = arith.constant 0 : i32
    %c0_i32_2 = arith.constant 0 : i32
    return %c0_i32, %c0_i32_0, %c0_i32_1 : i32, i32, i32
  }
  func.func @transform_3(%arg0: i32) -> (i32, i32) {
    %c0_i32 = arith.constant 0 : i32
    %c0_i32_0 = arith.constant 0 : i32
    return %arg0, %c0_i32 : i32, i32
  }
}

</mosaic_0001>

<bundles_post_ra>
// kernel: vae_forward.1
= control target key start
LH: loop header
LB: loop body
LE: loop exit
PB: predicated region body
PF: predicated region fallthrough
CT: control target
= control target key end

     0   :  { %s3275_s12 = smov 0   ;;  %s4321_s0 = inlined_call_operand.vmem [shape: f32[256,128], index: 0, kind: input, shape index: {}]   ;;  %s4322_s1 = inlined_call_operand.vmem [shape: bf16[8,128,128], index: 1, kind: input, shape index: {}]   ;;  %s4323_s2 = inlined_call_operand.vmem [shape: f32[8,1,128], index: 2, kind: input, shape index: {}]   ;;  %s4324_s3 = inlined_call_operand.vmem [shape: f32[256,32], index: 3, kind: output, shape index: {}]  }
   0x1 LB: > { %s2507_s13 = sadd.s32 4294967295, %s3248_s12   ;;  %p2511_p0 = scmp.ge.s32.totalorder %s3248_s12, 1  ;;  %s3248_s12 = sphi %s3275_s12, %s13_s12  }
   0x2   : > { %p138_p1 = scmp.lt.s32.totalorder %s3248_s12, 3 }
   0x4   : > { %p139_p2 = pnand %p2511_p0, %p138_p1 }
   0x6   : > { %142 = sbr.rel (%p139_p2) target bundleno = 1979 (0x7bb), region = 32 }
   0xd   : > { %v3146_v0 = vld [vmem:[%s4322_s1] sm:$0xff]   ;;  %s2512_s16 = sshll.u32 %s2507_s13, 4  ;;  %v3147_v1 = vld [vmem:[%s4322_s1 + $0x8] sm:$0xff]   ;;  %v3148_v2 = vld [vmem:[%s4322_s1 + $0x10] sm:$0xff]   ;;  %s3250_s13 = smov 116   ;;  %vm1349_vm0 = vcmask 31744  }
   0xe   : > { %p163_p3 = scmp.lt.s32.totalorder %s2512_s16, 31  ;;  %2877 = vmatprep.subr.bf16.mxu0 %v3146_v0  ;;  %v3149_v3 = vld [vmem:[%s4322_s1 + $0x18] sm:$0xff]   ;;  %v3150_v7 = vld [vmem:[%s4322_s1 + $0x20] sm:$0xff]   ;;  %v3155_v9 = vld [vmem:[%s4322_s1 + $0x48] sm:$0xff]   ;;  %s3251_s9 = smov 124   ;;  %vm2366_vm2 = vcmask 130048  }
   0xf   : > { %2878 = vmatpush3.bf16.msra.mxu0 %v3146_v0  ;;  %v3154_v8 = vld [vmem:[%s4322_s1 + $0x40] sm:$0xff]   ;;  %v3151_v10 = vld [vmem:[%s4322_s1 + $0x28] sm:$0xff]   ;;  %v3156_v11 = vld [vmem:[%s4322_s1 + $0x50] sm:$0xff]   ;;  %s3252_s10 = smov 4   ;;  %s3253_s11 = smov 20   ;;  %vm2383_vm3 = vcmask 162816  }
  0x10   : > { %s4330_s16 = smov (!%p163_p3, %s2512_s16), 31  ;;  %2879 = vmatprep.subr.bf16.mxu0 %v3147_v1  ;;  %2909 = vmatprep.subr.bf16.mxu1 %v3154_v8  ;;  %v3152_v12 = vld [vmem:[%s4322_s1 + $0x30] sm:$0xff]   ;;  %v3157_v13 = vld [vmem:[%s4322_s1 + $0x58] sm:$0xff]   ;;  %v3158_v15 = vld [vmem:[%s4322_s1 + $0x60] sm:$0xff]   ;;  %vm2400_vm4 = vcmask 195584   ;;  %vm2417_vm5 = vcmask 228352  }
  0x11   : > { %s2513_s21 = sshll.u32 %s4330_s16, 3  ;;  %2910 = vmatpush3.bf16.msra.mxu1 %v3154_v8  ;;  %v3153_v14 = vld [vmem:[%s4322_s1 + $0x38] sm:$0xff]   ;;  %v3159_v20 = vld [vmem:[%s4322_s1 + $0x68] sm:$0xff]   ;;  %v3160_v38 = vld [vmem:[%s4322_s1 + $0x70] sm:$0xff]   ;;  %vm2434_vm6 = vcmask 261120  }
  0x12   : > { %s3300_s24 = scalar_lea.vmem %s4321_s0, %s2513_s21  ;;  %2911 = vmatprep.subr.bf16.mxu1 %v3155_v9  ;;  %v3161_v39 = vld [vmem:[%s4322_s1 + $0x78] sm:$0xff]   ;;  %v3162_v40 = vld [vmem:[%s4322_s1 + $0x80] sm:$0xff]   ;;  %v3163_v41 = vld [vmem:[%s4322_s1 + $0x88] sm:$0xff]   ;;  %s4155_s27 = scalar_lea.vmem %s4324_s3, %s2513_s21 }
  0x13   : > { %2880 = vmatpush3.bf16.msra.mxu0 %v3147_v1  ;;  %v3306_v4 = vld [vmem:[%s3300_s24] sm:$0xff]  ;;  %v3309_v5 = vld [vmem:[%s3300_s24 + $0x8] sm:$0xff]  ;;  %v3341_v16 = vld [vmem:[%s3300_s24 + $0x10] sm:$0xff] }
  0x14   : > { %2881 = vmatprep.subr.bf16.mxu0 %v3148_v2  ;;  %v191_v6 = vpack.c.bf16 %v3309_v5, %v3306_v4  ;;  %v3344_v17 = vld [vmem:[%s3300_s24 + $0x18] sm:$0xff]  ;;  %v3347_v18 = vld [vmem:[%s3300_s24 + $0x20] sm:$0xff]  ;;  %v3350_v19 = vld [vmem:[%s3300_s24 + $0x28] sm:$0xff]  ;;  %997 = vrot.lane.b32.xlu0 %v3306_v4, %s3250_s13 }
  0x15   : > { %2912 = vmatpush3.bf16.msra.mxu1 %v3155_v9  ;;  %v192_v21 = vpack.c.bf16 %v3344_v17, %v3341_v16  ;;  %v193_v22 = vpack.c.bf16 %v3350_v19, %v3347_v18  ;;  %v3360_v23 = vld [vmem:[%s3300_s24 + $0x30] sm:$0xff]  ;;  %v3363_v24 = vld [vmem:[%s3300_s24 + $0x38] sm:$0xff]  ;;  %v3366_v25 = vld [vmem:[%s3300_s24 + $0x40] sm:$0xff]  ;;  %1001 = vrot.lane.b32.xlu1 %v3341_v16, %s3250_s13 }
  0x16   : > { %2893 = vmatprep.mubr.bf16.mxu0 %v191_v6  ;;  %2913 = vmatprep.subr.bf16.mxu1 %v3156_v11  ;;  %v3369_v26 = vld [vmem:[%s3300_s24 + $0x48] sm:$0xff]  ;;  %v194_v27 = vpack.c.bf16 %v3363_v24, %v3360_v23  ;;  %v3376_v29 = vld [vmem:[%s3300_s24 + $0x50] sm:$0xff]  ;;  %v3379_v30 = vld [vmem:[%s3300_s24 + $0x58] sm:$0xff] }
  0x17   : > { %2882 = vmatpush3.bf16.msra.mxu0 %v3148_v2  ;;  %v195_v28 = vpack.c.bf16 %v3369_v26, %v3366_v25  ;;  %v3382_v31 = vld [vmem:[%s3300_s24 + $0x60] sm:$0xff]  ;;  %v3385_v32 = vld [vmem:[%s3300_s24 + $0x68] sm:$0xff]  ;;  %v196_v33 = vpack.c.bf16 %v3379_v30, %v3376_v29  ;;  %v3392_v35 = vld [vmem:[%s3300_s24 + $0x70] sm:$0xff] }
  0x18   : > { %2883 = vmatprep.subr.bf16.mxu0 %v3149_v3  ;;  %v197_v34 = vpack.c.bf16 %v3385_v32, %v3382_v31  ;;  %v3395_v36 = vld [vmem:[%s3300_s24 + $0x78] sm:$0xff]  ;;  %v3164_v42 = vld [vmem:[%s4322_s1 + $0x90] sm:$0xff]   ;;  %v3166_v44 = vld [vmem:[%s4322_s1 + $0xa0] sm:$0xff]   ;;  %999 = vrot.lane.b32.xlu0 %v3309_v5, %s3250_s13 }
  0x19   : > { %2914 = vmatpush3.bf16.msra.mxu1 %v3156_v11  ;;  %v198_v37 = vpack.c.bf16 %v3395_v36, %v3392_v35  ;;  %v3165_v43 = vld [vmem:[%s4322_s1 + $0x98] sm:$0xff]   ;;  %v3167_v45 = vld [vmem:[%s4322_s1 + $0xa8] sm:$0xff]   ;;  %v2516_v46 = vld [vmem:[%s4323_s2] ss:$0 sm:$0xff]  ;;  %1003 = vrot.lane.b32.xlu1 %v3344_v17, %s3250_s13 }
  0x1a   : > { %2915 = vmatprep.subr.bf16.mxu1 %v3157_v13  ;;  %v2568_v4 = vld [vmem:[%s4323_s2 + $0x2] ss:$0 sm:$0xff]  ;;  %vm3747_vm1 = vmpackc.low %vm1349_vm0, %vm1349_vm0 }
  0x1b   : > { %2884 = vmatpush3.bf16.msra.mxu0 %v3149_v3 }
  0x1c   : > { %2885 = vmatprep.subr.bf16.mxu0 %v3150_v7  ;;  %1005 = vrot.lane.b32.xlu0 %v3347_v18, %s3250_s13 }
  0x1d   : > { %2916 = vmatpush3.bf16.msra.mxu1 %v3157_v13  ;;  %1007 = vrot.lane.b32.xlu1 %v3350_v19, %s3250_s13 }
  0x1e   : > { %2917 = vmatprep.subr.bf16.mxu1 %v3158_v15 }
  0x1f   : > { %2886 = vmatpush3.bf16.msra.mxu0 %v3150_v7 }
  0x20   : > { %2887 = vmatprep.subr.bf16.mxu0 %v3151_v10  ;;  %1009 = vrot.lane.b32.xlu0 %v3360_v23, %s3250_s13 }
  0x21   : > { %2918 = vmatpush3.bf16.msra.mxu1 %v3158_v15  ;;  %1011 = vrot.lane.b32.xlu1 %v3363_v24, %s3250_s13 }
  0x22   : > { %2919 = vmatprep.subr.bf16.mxu1 %v3159_v20 }
  0x23   : > { %2888 = vmatpush3.bf16.msra.mxu0 %v3151_v10 }
  0x24   : > { %2889 = vmatprep.subr.bf16.mxu0 %v3152_v12  ;;  %1013 = vrot.lane.b32.xlu0 %v3366_v25, %s3250_s13 }
  0x25   : > { %2920 = vmatpush3.bf16.msra.mxu1 %v3159_v20  ;;  %1015 = vrot.lane.b32.xlu1 %v3369_v26, %s3250_s13 }
  0x26   : > { %2921 = vmatprep.subr.bf16.mxu1 %v3160_v38 }
  0x27   : > { %2890 = vmatpush3.bf16.msra.mxu0 %v3152_v12 }
  0x28   : > { %2891 = vmatprep.subr.bf16.mxu0 %v3153_v14  ;;  %1017 = vrot.lane.b32.xlu0 %v3376_v29, %s3250_s13 }
  0x29   : > { %2922 = vmatpush3.bf16.msra.mxu1 %v3160_v38  ;;  %1019 = vrot.lane.b32.xlu1 %v3379_v30, %s3250_s13 }
  0x2a   : > { %2923 = vmatprep.subr.bf16.mxu1 %v3161_v39 }
  0x2b   : > { %2892 = vmatpush3.bf16.msra.mxu0 %v3153_v14 }
  0x2c   : > { %2941 = vmatprep.subr.bf16.mxu0 %v3162_v40  ;;  %1021 = vrot.lane.b32.xlu0 %v3382_v31, %s3250_s13 }
  0x2d   : > { %2924 = vmatpush3.bf16.msra.mxu1 %v3161_v39  ;;  %1023 = vrot.lane.b32.xlu1 %v3385_v32, %s3250_s13 }
  0x2e   : > { %2894 = vmatmul.mubr.bf16.vlgmr.msra.gmra.mrb[0].mxu0 %v192_v21 }
  0x2f   : > { %2897 = vmatprep.mubr.bf16.mxu0 %v193_v22  ;;  %2942 = vmatpush3.bf16.msra.mxu0 %v3162_v40 }
  0x30   : > { %2943 = vmatprep.subr.bf16.mxu0 %v3163_v41  ;;  %1025 = vrot.lane.b32.xlu0 %v3392_v35, %s3250_s13 }
  0x31   : > { %1027 = vrot.lane.b32.xlu1 %v3395_v36, %s3250_s13  ;;  %s3254_s13 = smov 16  }
  0x33   : > { %2944 = vmatpush3.bf16.msra.mxu0 %v3163_v41 }
  0x34   : > { %2945 = vmatprep.subr.bf16.mxu0 %v3164_v42 }
  0x36   : > { %2898 = vmatmul.mubr.bf16.gmra.mrb[4].mxu0 %v194_v27 }
  0x37   : > { %2901 = vmatprep.mubr.bf16.mxu0 %v195_v28  ;;  %2946 = vmatpush3.bf16.msra.mxu0 %v3164_v42 }
  0x38   : > { %2947 = vmatprep.subr.bf16.mxu0 %v3165_v43 }
  0x3b   : > { %2948 = vmatpush3.bf16.msra.mxu0 %v3165_v43 }
  0x3c   : > { %2949 = vmatprep.subr.bf16.mxu0 %v3166_v44 }
  0x3e   : > { %2902 = vmatmul.mubr.bf16.gmra.mrb[8].mxu0 %v196_v33 }
  0x3f   : > { %2905 = vmatprep.mubr.bf16.mxu0 %v197_v34  ;;  %2950 = vmatpush3.bf16.msra.mxu0 %v3166_v44 }
  0x40   : > { %2951 = vmatprep.subr.bf16.mxu0 %v3167_v45 }
  0x43   : > { %2952 = vmatpush3.bf16.msra.mxu0 %v3167_v45 }
  0x46   : > { %2906 = vmatmul.mubr.bf16.gmra.mrb[12].mxu0 %v198_v37 }
 0x101   : > { %v2895_v47 = vpop.f32.mrb[0].mxu0 }
 0x102   : > { %v313_v48 = vadd.f32 %v2895_v47, %v2516_v46  ;;  %v304_v49 = vpop.f32.mrb[1].mxu0 }
 0x103   : > { %v305_v50 = vadd.f32 %v2516_v46, %v304_v49  ;;  %v2896_v51 = vpop.f32.mrb[2].mxu0 }
 0x104   : > { %v316_v52 = vadd.f32 %v2896_v51, %v2516_v46  ;;  %v307_v53 = vpop.f32.mrb[3].mxu0  ;;  %v369_v55 = vmax.f32 %v313_v48, 0.0 }
 0x105   : > { %v308_v54 = vadd.f32 %v2516_v46, %v307_v53  ;;  %v367_v57 = vmax.f32 %v305_v50, 0.0 }
 0x106   : > { %v370_v56 = vmax.f32 %v316_v52, 0.0 }
 0x107   : > { %v368_v58 = vmax.f32 %v308_v54, 0.0 }
 0x108   : > { %v384_v59 = vpack.c.bf16 %v370_v56, %v369_v55  ;;  %v3168_v56 = vld [vmem:[%s4322_s1 + $0xb0] sm:$0xff]  }
 0x109   : > { %v2899_v60 = vpop.f32.mrb[4].mxu0  ;;  %v383_v61 = vpack.c.bf16 %v368_v58, %v367_v57  ;;  %2953 = vmatprep.subr.bf16.mxu0 %v3168_v56  ;;  %v3169_v57 = vld [vmem:[%s4322_s1 + $0xb8] sm:$0xff]   ;;  %v3171_v58 = vld [vmem:[%s4322_s1 + $0xc8] sm:$0xff]  }
 0x10a   : > { %v329_v62 = vadd.f32 %v2899_v60, %v2516_v46  ;;  %v320_v63 = vpop.f32.mrb[5].mxu0  ;;  %2954 = vmatpush3.bf16.msra.mxu0 %v3168_v56  ;;  %v3173_v60 = vld [vmem:[%s4322_s1 + $0xd8] sm:$0xff]  }
 0x10b   : > { %v321_v0 = vadd.f32 %v2516_v46, %v320_v63  ;;  %v2900_v1 = vpop.f32.mrb[6].mxu0  ;;  %2925 = vmatprep.mubr.bf16.mxu1 %v383_v61  ;;  %2955 = vmatprep.subr.bf16.mxu0 %v3169_v57  ;;  %v3174_v61 = vld [vmem:[%s4322_s1 + $0xe0] sm:$0xff]  }
 0x10c   : > { %v332_v2 = vadd.f32 %v2900_v1, %v2516_v46  ;;  %v323_v3 = vpop.f32.mrb[7].mxu0  ;;  %2926 = vmatmul.mubr.bf16.vlgmr.msra.gmra.mrb[0].mxu1 %v384_v59  ;;  %v373_v7 = vmax.f32 %v329_v62, 0.0  ;;  %v3172_v59 = vld [vmem:[%s4322_s1 + $0xd0] sm:$0xff]   ;;  %v3175_v62 = vld [vmem:[%s4322_s1 + $0xe8] sm:$0xff]   ;;  %v2542_v63 = vld [vmem:[%s4323_s2 + $0x1] ss:$0 sm:$0xff] }
 0x10d   : > { %v324_v6 = vadd.f32 %v2516_v46, %v323_v3  ;;  %v371_v9 = vmax.f32 %v321_v0, 0.0 }
 0x10e   : > { %v374_v8 = vmax.f32 %v332_v2, 0.0  ;;  %2956 = vmatpush3.bf16.msra.mxu0 %v3169_v57 }
 0x10f   : > { %v372_v10 = vmax.f32 %v324_v6, 0.0 }
 0x110   : > { %v386_v11 = vpack.c.bf16 %v374_v8, %v373_v7 }
 0x111   : > { %v385_v12 = vpack.c.bf16 %v372_v10, %v371_v9  ;;  %v2903_v13 = vpop.f32.mrb[8].mxu0 }
 0x112   : > { %v345_v14 = vadd.f32 %v2903_v13, %v2516_v46  ;;  %v336_v15 = vpop.f32.mrb[9].mxu0 }
 0x113   : > { %v337_v20 = vadd.f32 %v2516_v46, %v336_v15  ;;  %v2904_v21 = vpop.f32.mrb[10].mxu0  ;;  %2929 = vmatprep.mubr.bf16.mxu1 %v385_v12 }
 0x114   : > { %v348_v22 = vadd.f32 %v2904_v21, %v2516_v46  ;;  %v339_v27 = vpop.f32.mrb[11].mxu0  ;;  %2930 = vmatmul.mubr.bf16.gmra.mrb[4].mxu1 %v386_v11  ;;  %v377_v33 = vmax.f32 %v345_v14, 0.0 }
 0x115   : > { %v340_v28 = vadd.f32 %v2516_v46, %v339_v27  ;;  %v375_v37 = vmax.f32 %v337_v20, 0.0 }
 0x116   : > { %v378_v34 = vmax.f32 %v348_v22, 0.0 }
 0x117   : > { %v376_v38 = vmax.f32 %v340_v28, 0.0 }
 0x118   : > { %v388_v39 = vpack.c.bf16 %v378_v34, %v377_v33 }
 0x119   : > { %v387_v40 = vpack.c.bf16 %v376_v38, %v375_v37  ;;  %v2907_v41 = vpop.f32.mrb[12].mxu0 }
 0x11a   : > { %v361_v42 = vadd.f32 %v2907_v41, %v2516_v46  ;;  %v352_v43 = vpop.f32.mrb[13].mxu0 }
 0x11b   : > { %v353_v44 = vadd.f32 %v2516_v46, %v352_v43  ;;  %v2908_v45 = vpop.f32.mrb[14].mxu0  ;;  %2933 = vmatprep.mubr.bf16.mxu1 %v387_v40 }
 0x11c   : > { %v364_v47 = vadd.f32 %v2908_v45, %v2516_v46  ;;  %v355_v48 = vpop.f32.mrb[15].mxu0  ;;  %2934 = vmatmul.mubr.bf16.gmra.mrb[8].mxu1 %v388_v39  ;;  %v381_v50 = vmax.f32 %v361_v42, 0.0 }
 0x11d   : > { %v356_v49 = vadd.f32 %v2516_v46, %v355_v48  ;;  %v379_v52 = vmax.f32 %v353_v44, 0.0  ;;  %v3170_v46 = vld [vmem:[%s4322_s1 + $0xc0] sm:$0xff]  }
 0x11e   : > { %v382_v51 = vmax.f32 %v364_v47, 0.0  ;;  %2973 = vmatprep.subr.bf16.mxu1 %v3170_v46 }
 0x11f   : > { %v380_v53 = vmax.f32 %v356_v49, 0.0  ;;  %2974 = vmatpush3.bf16.msra.mxu1 %v3170_v46 }
 0x120   : > { %v390_v54 = vpack.c.bf16 %v382_v51, %v381_v50  ;;  %2975 = vmatprep.subr.bf16.mxu1 %v3171_v58 }
 0x121   : > { %v389_v55 = vpack.c.bf16 %v380_v53, %v379_v52 }
 0x123   : > { %2937 = vmatprep.mubr.bf16.mxu1 %v389_v55  ;;  %2976 = vmatpush3.bf16.msra.mxu1 %v3171_v58 }
 0x124   : > { %2938 = vmatmul.mubr.bf16.gmra.mrb[12].mxu1 %v390_v54  ;;  %2977 = vmatprep.subr.bf16.mxu1 %v3172_v59 }
 0x127   : > { %2978 = vmatpush3.bf16.msra.mxu1 %v3172_v59 }
 0x128   : > { %2979 = vmatprep.subr.bf16.mxu1 %v3173_v60 }
 0x12b   : > { %2980 = vmatpush3.bf16.msra.mxu1 %v3173_v60 }
 0x12c   : > { %2981 = vmatprep.subr.bf16.mxu1 %v3174_v61 }
 0x12f   : > { %2982 = vmatpush3.bf16.msra.mxu1 %v3174_v61 }
 0x130   : > { %2983 = vmatprep.subr.bf16.mxu1 %v3175_v62 }
 0x133   : > { %2984 = vmatpush3.bf16.msra.mxu1 %v3175_v62 }
 0x1df   : > { %v2927_v0 = vpop.f32.mrb[0].mxu1 }
 0x1e0   : > { %v507_v1 = vadd.f32 %v2927_v0, %v2542_v63  ;;  %v498_v2 = vpop.f32.mrb[1].mxu1 }
 0x1e1   : > { %v499_v3 = vadd.f32 %v2542_v63, %v498_v2  ;;  %v2928_v6 = vpop.f32.mrb[2].mxu1 }
 0x1e2   : > { %v510_v7 = vadd.f32 %v2928_v6, %v2542_v63  ;;  %v501_v8 = vpop.f32.mrb[3].mxu1  ;;  %v563_v10 = vmax.f32 %v507_v1, 0.0 }
 0x1e3   : > { %v502_v9 = vadd.f32 %v2542_v63, %v501_v8  ;;  %v561_v12 = vmax.f32 %v499_v3, 0.0 }
 0x1e4   : > { %v564_v11 = vmax.f32 %v510_v7, 0.0 }
 0x1e5   : > { %v562_v13 = vmax.f32 %v502_v9, 0.0 }
 0x1e6   : > { %v578_v14 = vpack.c.bf16 %v564_v11, %v563_v10  ;;  %v3176_v11 = vld [vmem:[%s4322_s1 + $0xf0] sm:$0xff]  }
 0x1e7   : > { %v577_v15 = vpack.c.bf16 %v562_v13, %v561_v12  ;;  %v2931_v20 = vpop.f32.mrb[4].mxu1  ;;  %2985 = vmatprep.subr.bf16.mxu1 %v3176_v11  ;;  %v3177_v12 = vld [vmem:[%s4322_s1 + $0xf8] sm:$0xff]  }
 0x1e8   : > { %v523_v21 = vadd.f32 %v2931_v20, %v2542_v63  ;;  %v514_v22 = vpop.f32.mrb[5].mxu1  ;;  %2986 = vmatpush3.bf16.msra.mxu1 %v3176_v11  ;;  %v3496_v11 = vld [vmem:[%s4323_s2 + $0x3] ss:$0 sm:$0xff] }
 0x1e9   : > { %v515_v27 = vadd.f32 %v2542_v63, %v514_v22  ;;  %v2932_v28 = vpop.f32.mrb[6].mxu1  ;;  %2957 = vmatprep.mubr.bf16.mxu0 %v577_v15  ;;  %2987 = vmatprep.subr.bf16.mxu1 %v3177_v12 }
 0x1ea   : > { %v526_v33 = vadd.f32 %v2932_v28, %v2542_v63  ;;  %v517_v34 = vpop.f32.mrb[7].mxu1  ;;  %2958 = vmatmul.mubr.bf16.vlgmr.msra.gmra.mrb[16].mxu0 %v578_v14  ;;  %v567_v38 = vmax.f32 %v523_v21, 0.0 }
 0x1eb   : > { %v518_v37 = vadd.f32 %v2542_v63, %v517_v34  ;;  %v565_v40 = vmax.f32 %v515_v27, 0.0 }
 0x1ec   : > { %v568_v39 = vmax.f32 %v526_v33, 0.0  ;;  %2988 = vmatpush3.bf16.msra.mxu1 %v3177_v12 }
 0x1ed   : > { %v566_v41 = vmax.f32 %v518_v37, 0.0 }
 0x1ee   : > { %v580_v42 = vpack.c.bf16 %v568_v39, %v567_v38 }
 0x1ef   : > { %v579_v43 = vpack.c.bf16 %v566_v41, %v565_v40  ;;  %v2935_v44 = vpop.f32.mrb[8].mxu1 }
 0x1f0   : > { %v539_v45 = vadd.f32 %v2935_v44, %v2542_v63  ;;  %v530_v47 = vpop.f32.mrb[9].mxu1 }
 0x1f1   : > { %v531_v48 = vadd.f32 %v2542_v63, %v530_v47  ;;  %v2936_v49 = vpop.f32.mrb[10].mxu1  ;;  %2961 = vmatprep.mubr.bf16.mxu0 %v579_v43 }
 0x1f2   : > { %v542_v50 = vadd.f32 %v2936_v49, %v2542_v63  ;;  %v533_v51 = vpop.f32.mrb[11].mxu1  ;;  %2962 = vmatmul.mubr.bf16.gmra.mrb[20].mxu0 %v580_v42  ;;  %v571_v53 = vmax.f32 %v539_v45, 0.0 }
 0x1f3   : > { %v534_v52 = vadd.f32 %v2542_v63, %v533_v51  ;;  %v569_v55 = vmax.f32 %v531_v48, 0.0 }
 0x1f4   : > { %v572_v54 = vmax.f32 %v542_v50, 0.0 }
 0x1f5   : > { %v570_v56 = vmax.f32 %v534_v52, 0.0 }
 0x1f6   : > { %v582_v57 = vpack.c.bf16 %v572_v54, %v571_v53 }
 0x1f7   : > { %v581_v46 = vpack.c.bf16 %v570_v56, %v569_v55  ;;  %v2939_v58 = vpop.f32.mrb[12].mxu1 }
 0x1f8   : > { %v555_v59 = vadd.f32 %v2939_v58, %v2542_v63  ;;  %v546_v60 = vpop.f32.mrb[13].mxu1 }
 0x1f9   : > { %v547_v61 = vadd.f32 %v2542_v63, %v546_v60  ;;  %v2940_v62 = vpop.f32.mrb[14].mxu1  ;;  %2965 = vmatprep.mubr.bf16.mxu0 %v581_v46 }
 0x1fa   : > { %v558_v0 = vadd.f32 %v2940_v62, %v2542_v63  ;;  %v549_v1 = vpop.f32.mrb[15].mxu1  ;;  %2966 = vmatmul.mubr.bf16.gmra.mrb[24].mxu0 %v582_v57  ;;  %v575_v3 = vmax.f32 %v555_v59, 0.0 }
 0x1fb   : > { %v550_v2 = vadd.f32 %v2542_v63, %v549_v1  ;;  %v573_v7 = vmax.f32 %v547_v61, 0.0 }
 0x1fc   : > { %v576_v6 = vmax.f32 %v558_v0, 0.0 }
 0x1fd   : > { %v574_v8 = vmax.f32 %v550_v2, 0.0 }
 0x1fe   : > { %v584_v9 = vpack.c.bf16 %v576_v6, %v575_v3  ;;  %v3178_v6 = vld [vmem:[%s4322_s1 + $0x100] sm:$0xff]  }
 0x1ff   : > { %v583_v10 = vpack.c.bf16 %v574_v8, %v573_v7  ;;  %3005 = vmatprep.subr.bf16.mxu0 %v3178_v6  ;;  %v3179_v7 = vld [vmem:[%s4322_s1 + $0x108] sm:$0xff]   ;;  %v3180_v8 = vld [vmem:[%s4322_s1 + $0x110] sm:$0xff]  }
 0x200   : > { %3006 = vmatpush3.bf16.msra.mxu0 %v3178_v6 }
 0x201   : > { %2969 = vmatprep.mubr.bf16.mxu0 %v583_v10  ;;  %3007 = vmatprep.subr.bf16.mxu0 %v3179_v7  ;;  %v3182_v10 = vld [vmem:[%s4322_s1 + $0x120] sm:$0xff]  }
 0x202   : > { %2970 = vmatmul.mubr.bf16.gmra.mrb[28].mxu0 %v584_v9  ;;  %v3181_v9 = vld [vmem:[%s4322_s1 + $0x118] sm:$0xff]  }
 0x204   : > { %3008 = vmatpush3.bf16.msra.mxu0 %v3179_v7 }
 0x205   : > { %3009 = vmatprep.subr.bf16.mxu0 %v3180_v8 }
 0x208   : > { %3010 = vmatpush3.bf16.msra.mxu0 %v3180_v8 }
 0x209   : > { %3011 = vmatprep.subr.bf16.mxu0 %v3181_v9 }
 0x20c   : > { %3012 = vmatpush3.bf16.msra.mxu0 %v3181_v9 }
 0x20d   : > { %3013 = vmatprep.subr.bf16.mxu0 %v3182_v10 }
 0x210   : > { %3014 = vmatpush3.bf16.msra.mxu0 %v3182_v10 }
 0x2bd   : > { %v2959_v5 = vpop.f32.mrb[16].mxu0 }
 0x2be   : > { %v701_v16 = vadd.f32 %v2959_v5, %v2568_v4  ;;  %v692_v17 = vpop.f32.mrb[17].mxu0 }
 0x2bf   : > { %v693_v18 = vadd.f32 %v2568_v4, %v692_v17  ;;  %v2960_v19 = vpop.f32.mrb[18].mxu0  ;;  %v3183_v17 = vld [vmem:[%s4322_s1 + $0x128] sm:$0xff]  }
 0x2c0   : > { %v704_v23 = vadd.f32 %v2960_v19, %v2568_v4  ;;  %v695_v24 = vpop.f32.mrb[19].mxu0  ;;  %v757_v26 = vmax.f32 %v701_v16, 0.0  ;;  %3015 = vmatprep.subr.bf16.mxu0 %v3183_v17 }
 0x2c1   : > { %v696_v25 = vadd.f32 %v2568_v4, %v695_v24  ;;  %v755_v30 = vmax.f32 %v693_v18, 0.0  ;;  %3016 = vmatpush3.bf16.msra.mxu0 %v3183_v17 }
 0x2c2   : > { %v758_v29 = vmax.f32 %v704_v23, 0.0  ;;  %v1002_v23 = vpop.permute.xlu1 %1001 }
 0x2c3   : > { %v756_v31 = vmax.f32 %v696_v25, 0.0 }
 0x2c4   : > { %v772_v32 = vpack.c.bf16 %v758_v29, %v757_v26 }
 0x2c5   : > { %v771_v35 = vpack.c.bf16 %v756_v31, %v755_v30  ;;  %v2963_v63 = vpop.f32.mrb[20].mxu0 }
 0x2c6   : > { %v717_v36 = vadd.f32 %v2963_v63, %v2568_v4  ;;  %v708_v13 = vpop.f32.mrb[21].mxu0  ;;  %v3184_v63 = vld [vmem:[%s4322_s1 + $0x130] sm:$0xff]  }
 0x2c7   : > { %v709_v14 = vadd.f32 %v2568_v4, %v708_v13  ;;  %v2964_v15 = vpop.f32.mrb[22].mxu0  ;;  %2989 = vmatprep.mubr.bf16.mxu1 %v771_v35  ;;  %v1004_v13 = vpop.permute.xlu1 %1003  ;;  %3017 = vmatprep.subr.bf16.mxu0 %v3184_v63 }
 0x2c8   : > { %v720_v20 = vadd.f32 %v2964_v15, %v2568_v4  ;;  %v711_v21 = vpop.f32.mrb[23].mxu0  ;;  %2990 = vmatmul.mubr.bf16.vlgmr.msra.gmra.mrb[16].mxu1 %v772_v32  ;;  %v761_v27 = vmax.f32 %v717_v36, 0.0  ;;  %3018 = vmatpush3.bf16.msra.mxu0 %v3184_v63 }
 0x2c9   : > { %v712_v22 = vadd.f32 %v2568_v4, %v711_v21  ;;  %v759_v33 = vmax.f32 %v709_v14, 0.0 }
 0x2ca   : > { %v762_v28 = vmax.f32 %v720_v20, 0.0 }
 0x2cb   : > { %v760_v34 = vmax.f32 %v712_v22, 0.0  ;;  %v3185_v22 = vld [vmem:[%s4322_s1 + $0x138] sm:$0xff]  }
 0x2cc   : > { %v774_v37 = vpack.c.bf16 %v762_v28, %v761_v27  ;;  %3019 = vmatprep.subr.bf16.mxu0 %v3185_v22 }
 0x2cd   : > { %v773_v38 = vpack.c.bf16 %v760_v34, %v759_v33  ;;  %v2967_v39 = vpop.f32.mrb[24].mxu0  ;;  %3020 = vmatpush3.bf16.msra.mxu0 %v3185_v22 }
 0x2ce   : > { %v733_v40 = vadd.f32 %v2967_v39, %v2568_v4  ;;  %v724_v41 = vpop.f32.mrb[25].mxu0 }
 0x2cf   : > { %v725_v42 = vadd.f32 %v2568_v4, %v724_v41  ;;  %v2968_v43 = vpop.f32.mrb[26].mxu0  ;;  %2993 = vmatprep.mubr.bf16.mxu1 %v773_v38  ;;  %v1008_v41 = vpop.permute.xlu1 %1007 }
 0x2d0   : > { %v736_v44 = vadd.f32 %v2968_v43, %v2568_v4  ;;  %v727_v45 = vpop.f32.mrb[27].mxu0  ;;  %2994 = vmatmul.mubr.bf16.gmra.mrb[20].mxu1 %v774_v37  ;;  %v765_v48 = vmax.f32 %v733_v40, 0.0 }
 0x2d1   : > { %v728_v47 = vadd.f32 %v2568_v4, %v727_v45  ;;  %v763_v50 = vmax.f32 %v725_v42, 0.0 }
 0x2d2   : > { %v766_v49 = vmax.f32 %v736_v44, 0.0 }
 0x2d3   : > { %v764_v51 = vmax.f32 %v728_v47, 0.0 }
 0x2d4   : > { %v776_v52 = vpack.c.bf16 %v766_v49, %v765_v48 }
 0x2d5   : > { %v775_v53 = vpack.c.bf16 %v764_v51, %v763_v50  ;;  %v2971_v54 = vpop.f32.mrb[28].mxu0 }
 0x2d6   : > { %v749_v55 = vadd.f32 %v2971_v54, %v2568_v4  ;;  %v740_v56 = vpop.f32.mrb[29].mxu0 }
 0x2d7   : > { %v741_v57 = vadd.f32 %v2568_v4, %v740_v56  ;;  %v2972_v46 = vpop.f32.mrb[30].mxu0  ;;  %2997 = vmatprep.mubr.bf16.mxu1 %v775_v53 }
 0x2d8   : > { %v752_v58 = vadd.f32 %v2972_v46, %v2568_v4  ;;  %v743_v59 = vpop.f32.mrb[31].mxu0  ;;  %2998 = vmatmul.mubr.bf16.gmra.mrb[24].mxu1 %v776_v52  ;;  %v769_v61 = vmax.f32 %v749_v55, 0.0 }
 0x2d9   : > { %v744_v60 = vadd.f32 %v2568_v4, %v743_v59  ;;  %v767_v0 = vmax.f32 %v741_v57, 0.0  ;;  %v998_v4 = vpop.permute.xlu0 %997  ;;  %v1012_v59 = vpop.permute.xlu1 %1011 }
 0x2da   : > { %v770_v62 = vmax.f32 %v752_v58, 0.0 }
 0x2db   : > { %v768_v1 = vmax.f32 %v744_v60, 0.0 }
 0x2dc   : > { %v778_v2 = vpack.c.bf16 %v770_v62, %v769_v61 }
 0x2dd   : > { %v777_v3 = vpack.c.bf16 %v768_v1, %v767_v0  ;;  %v1000_v35 = vpop.permute.xlu0 %999 }
 0x2df   : > { %3001 = vmatprep.mubr.bf16.mxu1 %v777_v3 }
 0x2e0   : > { %3002 = vmatmul.mubr.bf16.gmra.mrb[28].mxu1 %v778_v2 }
 0x2e1   : > { %v1006_v38 = vpop.permute.xlu0 %1005 }
 0x2e5   : > { %v1010_v52 = vpop.permute.xlu0 %1009 }
 0x2e9   : > { %v1014_v3 = vpop.permute.xlu0 %1013 }
 0x39b   : > { %v2991_v12 = vpop.f32.mrb[16].mxu1 }
 0x39c   : > { %v3499_v5 = vadd.f32 %v2991_v12, %v3496_v11  ;;  %v886_v16 = vpop.f32.mrb[17].mxu1 }
 0x39d   : > { %v3505_v18 = vadd.f32 %v3496_v11, %v886_v16  ;;  %v2992_v19 = vpop.f32.mrb[18].mxu1  ;;  %v1016_v16 = vpop.permute.xlu1 %1015 }
 0x39e   : > { %v953_v24 = vmul.f32 1.442695, %v3499_v5  ;;  %v3509_v25 = vadd.f32 %v2992_v19, %v3496_v11  ;;  %v889_v26 = vpop.f32.mrb[19].mxu1 }
 0x39f   : > { %v949_v29 = vmul.f32 1.442695, %v3505_v18  ;;  %v3513_v30 = vadd.f32 %v3496_v11, %v889_v26 }
 0x3a0   : > { %v955_v31 = vmul.f32 1.442695, %v3509_v25 }
 0x3a1   : > { %3210 = vpow2.f32 %v949_v29  ;;  %v951_v32 = vmul.f32 1.442695, %v3513_v30 }
 0x3a2   : > { %3212 = vpow2.f32 %v953_v24 }
 0x3a3   : > { %3214 = vpow2.f32 %v951_v32  ;;  %v2995_v36 = vpop.f32.mrb[20].mxu1 }
 0x3a4   : > { %v3521_v14 = vadd.f32 %v2995_v36, %v3496_v11  ;;  %v902_v15 = vpop.f32.mrb[21].mxu1  ;;  %3216 = vpow2.f32 %v955_v31  ;;  %v1018_v36 = vpop.permute.xlu0 %1017 }
 0x3a5   : > { %v3524_v20 = vadd.f32 %v3496_v11, %v902_v15  ;;  %v2996_v21 = vpop.f32.mrb[22].mxu1 }
 0x3a6   : > { %v961_v27 = vmul.f32 1.442695, %v3521_v14  ;;  %v3531_v28 = vadd.f32 %v2996_v21, %v3496_v11  ;;  %v905_v33 = vpop.f32.mrb[23].mxu1 }
 0x3a7   : > { %v957_v34 = vmul.f32 1.442695, %v3524_v20  ;;  %v3535_v37 = vadd.f32 %v3496_v11, %v905_v33 }
 0x3a8   : > { %v963_v39 = vmul.f32 1.442695, %v3531_v28 }
 0x3a9   : > { %3218 = vpow2.f32 %v957_v34  ;;  %v959_v40 = vmul.f32 1.442695, %v3535_v37 }
 0x3aa   : > { %3220 = vpow2.f32 %v961_v27 }
 0x3ab   : > { %v3539_v42 = vpop.eup %3210  ;;  %3222 = vpow2.f32 %v959_v40  ;;  %v2999_v43 = vpop.f32.mrb[24].mxu1 }
 0x3ac   : > { %v3541_v44 = vpop.eup %3212  ;;  %v1045_v45 = vmul.f32 %v3539_v42, %v998_v4  ;;  %v3545_v47 = vadd.f32 %v2999_v43, %v3496_v11  ;;  %v918_v48 = vpop.f32.mrb[25].mxu1  ;;  %3224 = vpow2.f32 %v963_v39 }
 0x3ad   : > { %v3547_v49 = vpop.eup %3214  ;;  %v3550_v50 = vadd.f32 %v3496_v11, %v918_v48  ;;  %v3000_v51 = vpop.f32.mrb[26].mxu1  ;;  %v1047_v60 = vmul.f32 %v3541_v44, %v1002_v23 }
 0x3ae   : > { %v1046_v53 = vmul.f32 %v3547_v49, %v1000_v35  ;;  %v969_v54 = vmul.f32 1.442695, %v3545_v47  ;;  %v3555_v55 = vadd.f32 %v3000_v51, %v3496_v11  ;;  %v921_v56 = vpop.f32.mrb[27].mxu1  ;;  %1077 = vrot.lane.b32.xlu0 %v1045_v45, %s3251_s9  ;;  %v3558_v57 = vpop.eup %3216 }
 0x3af   : > { %v965_v46 = vmul.f32 1.442695, %v3550_v50  ;;  %v3562_v58 = vadd.f32 %v3496_v11, %v921_v56  ;;  %v1048_v0 = vmul.f32 %v3558_v57, %v1004_v13 }
 0x3b0   : > { %1079 = vrot.lane.b32.xlu1 %v1046_v53, %s3251_s9  ;;  %v971_v61 = vmul.f32 1.442695, %v3555_v55 }
 0x3b1   : > { %3226 = vpow2.f32 %v965_v46  ;;  %v967_v62 = vmul.f32 1.442695, %v3562_v58 }
 0x3b2   : > { %3228 = vpow2.f32 %v969_v54  ;;  %1081 = vrot.lane.b32.xlu0 %v1047_v60, %s3251_s9  ;;  %v1157_v60 = vmul.f32 %v3505_v18, %v3505_v18 }
 0x3b3   : > { %v3570_v1 = vpop.eup %3218  ;;  %3230 = vpow2.f32 %v967_v62  ;;  %v3003_v2 = vpop.f32.mrb[28].mxu1  ;;  %v1159_v62 = vmul.f32 %v3499_v5, %v3499_v5 }
 0x3b4   : > { %v3572_v6 = vpop.eup %3220  ;;  %v1049_v7 = vmul.f32 %v3570_v1, %v1006_v38  ;;  %v3576_v8 = vadd.f32 %v3003_v2, %v3496_v11  ;;  %v934_v9 = vpop.f32.mrb[29].mxu1  ;;  %1083 = vrot.lane.b32.xlu1 %v1048_v0, %s3251_s9  ;;  %3232 = vpow2.f32 %v971_v61  ;;  %v1158_v61 = vmul.f32 %v3513_v30, %v3513_v30 }
 0x3b5   : > { %v3579_v10 = vpop.eup %3222  ;;  %v3582_v12 = vadd.f32 %v3496_v11, %v934_v9  ;;  %v3004_v4 = vpop.f32.mrb[30].mxu1  ;;  %v1051_v32 = vmul.f32 %v3572_v6, %v1010_v52  ;;  %v1160_v0 = vmul.f32 %v3509_v25, %v3509_v25  ;;  %v1161_v2 = vmul.f32 %v3524_v20, %v3524_v20 }
 0x3b6   : > { %v1050_v17 = vmul.f32 %v3579_v10, %v1008_v41  ;;  %v977_v19 = vmul.f32 1.442695, %v3576_v8  ;;  %v3587_v23 = vadd.f32 %v3004_v4, %v3496_v11  ;;  %v937_v24 = vpop.f32.mrb[31].mxu1  ;;  %1085 = vrot.lane.b32.xlu0 %v1049_v7, %s3251_s9  ;;  %v3590_v26 = vpop.eup %3224  ;;  %v1163_v7 = vmul.f32 %v3521_v14, %v3521_v14 }
 0x3b7   : > { %v973_v29 = vmul.f32 1.442695, %v3582_v12  ;;  %v3594_v31 = vadd.f32 %v3496_v11, %v937_v24  ;;  %v1052_v13 = vmul.f32 %v3590_v26, %v1012_v59  ;;  %v1020_v11 = vpop.permute.xlu1 %1019  ;;  %v1022_v38 = vpop.permute.xlu0 %1021  ;;  %v1164_v9 = vmul.f32 %v3531_v28, %v3531_v28 }
 0x3b8   : > { %1087 = vrot.lane.b32.xlu1 %v1050_v17, %s3251_s9  ;;  %v979_v35 = vmul.f32 1.442695, %v3587_v23  ;;  %v1165_v4 = vmul.f32 %v3550_v50, %v3550_v50  ;;  %v1167_v17 = vmul.f32 %v3545_v47, %v3545_v47  ;;  %v1169_v24 = vmul.f32 %v3582_v12, %v3582_v12 }
 0x3b9   : > { %3234 = vpow2.f32 %v973_v29  ;;  %v975_v63 = vmul.f32 1.442695, %v3594_v31  ;;  %v1170_v29 = vmul.f32 %v3594_v31, %v3594_v31 }
 0x3ba   : > { %3236 = vpow2.f32 %v977_v19  ;;  %1089 = vrot.lane.b32.xlu0 %v1051_v32, %s3251_s9  ;;  %v1168_v19 = vmul.f32 %v3555_v55, %v3555_v55  ;;  %v1171_v32 = vmul.f32 %v3576_v8, %v3576_v8 }
 0x3bb   : > { %v3602_v15 = vpop.eup %3226  ;;  %3238 = vpow2.f32 %v975_v63  ;;  %v1024_v40 = vpop.permute.xlu1 %1023 }
 0x3bc   : > { %v3604_v21 = vpop.eup %3228  ;;  %v1053_v22 = vmul.f32 %v3602_v15, %v1014_v3  ;;  %1091 = vrot.lane.b32.xlu1 %v1052_v13, %s3251_s9  ;;  %3240 = vpow2.f32 %v979_v35  ;;  %v1026_v52 = vpop.permute.xlu0 %1025  ;;  %v1162_v3 = vmul.f32 %v3535_v37, %v3535_v37  ;;  %v1172_v35 = vmul.f32 %v3587_v23, %v3587_v23 }
 0x3bd   : > { %v3608_v27 = vpop.eup %3230  ;;  %v1055_v39 = vmul.f32 %v3604_v21, %v1018_v36 }
 0x3be   : > { %v1054_v33 = vmul.f32 %v3608_v27, %v1016_v16  ;;  %1093 = vrot.lane.b32.xlu0 %v1053_v22, %s3251_s9  ;;  %v3612_v34 = vpop.eup %3232  ;;  %v1166_v16 = vmul.f32 %v3562_v58, %v3562_v58 }
 0x3bf   : > { %v1056_v41 = vmul.f32 %v3612_v34, %v1020_v11  ;;  %v1028_v56 = vpop.permute.xlu1 %1027 }
 0x3c0   : > { %1095 = vrot.lane.b32.xlu1 %v1054_v33, %s3251_s9 }
 0x3c2   : > { %1097 = vrot.lane.b32.xlu0 %v1055_v39, %s3251_s9 }
 0x3c3   : > { %v3618_v43 = vpop.eup %3234 }
 0x3c4   : > { %v3620_v45 = vpop.eup %3236  ;;  %v1057_v48 = vmul.f32 %v3618_v43, %v1022_v38  ;;  %1099 = vrot.lane.b32.xlu1 %v1056_v41, %s3251_s9 }
 0x3c5   : > { %v3624_v51 = vpop.eup %3238  ;;  %v1059_v46 = vmul.f32 %v3620_v45, %v1026_v52 }
 0x3c6   : > { %v1058_v53 = vmul.f32 %v3624_v51, %v1024_v40  ;;  %1101 = vrot.lane.b32.xlu0 %v1057_v48, %s3251_s9  ;;  %v3628_v54 = vpop.eup %3240 }
 0x3c7   : > { %v1060_v59 = vmul.f32 %v3628_v54, %v1028_v56 }
 0x3c8   : > { %1103 = vrot.lane.b32.xlu1 %v1058_v53, %s3251_s9 }
 0x3ca   : > { %1105 = vrot.lane.b32.xlu0 %v1059_v46, %s3251_s9 }
 0x3cc   : > { %1107 = vrot.lane.b32.xlu1 %v1060_v59, %s3251_s9 }
 0x3ce   : > { %1189 = vrot.lane.b32.xlu0 %v1157_v60, %s3252_s10 }
 0x3d0   : > { %1191 = vrot.lane.b32.xlu1 %v1158_v61, %s3252_s10 }
 0x3d2   : > { %1193 = vrot.lane.b32.xlu0 %v1159_v62, %s3252_s10 }
 0x3d4   : > { %1195 = vrot.lane.b32.xlu1 %v1160_v0, %s3252_s10 }
 0x3d6   : > { %1197 = vrot.lane.b32.xlu0 %v1161_v2, %s3252_s10 }
 0x3d8   : > { %1199 = vrot.lane.b32.xlu1 %v1162_v3, %s3252_s10 }
 0x3da   : > { %1201 = vrot.lane.b32.xlu0 %v1163_v7, %s3252_s10 }
 0x3dc   : > { %1203 = vrot.lane.b32.xlu1 %v1164_v9, %s3252_s10 }
 0x3de   : > { %1205 = vrot.lane.b32.xlu0 %v1165_v4, %s3252_s10 }
 0x3e0   : > { %1207 = vrot.lane.b32.xlu1 %v1166_v16, %s3252_s10 }
 0x3e2   : > { %1209 = vrot.lane.b32.xlu0 %v1167_v17, %s3252_s10 }
 0x3e4   : > { %1211 = vrot.lane.b32.xlu1 %v1168_v19, %s3252_s10 }
 0x3e6   : > { %1213 = vrot.lane.b32.xlu0 %v1169_v24, %s3252_s10 }
 0x3e8   : > { %1215 = vrot.lane.b32.xlu1 %v1170_v29, %s3252_s10 }
 0x3ea   : > { %1217 = vrot.lane.b32.xlu0 %v1171_v32, %s3252_s10 }
 0x3ec   : > { %1219 = vrot.lane.b32.xlu1 %v1172_v35, %s3252_s10 }
 0x3ee   : > { %2254 = vrot.lane.b32.xlu0 %v3505_v18, %s3253_s11 }
 0x3f0   : > { %2256 = vrot.lane.b32.xlu1 %v3513_v30, %s3253_s11 }
 0x3f2   : > { %2258 = vrot.lane.b32.xlu0 %v3499_v5, %s3253_s11 }
 0x3f4   : > { %2260 = vrot.lane.b32.xlu1 %v3509_v25, %s3253_s11 }
 0x3f6   : > { %2262 = vrot.lane.b32.xlu0 %v3524_v20, %s3253_s11 }
 0x3f8   : > { %2264 = vrot.lane.b32.xlu1 %v3535_v37, %s3253_s11 }
 0x3fa   : > { %2266 = vrot.lane.b32.xlu0 %v3521_v14, %s3253_s11 }
 0x3fc   : > { %2268 = vrot.lane.b32.xlu1 %v3531_v28, %s3253_s11 }
 0x3fe   : > { %2270 = vrot.lane.b32.xlu0 %v3550_v50, %s3253_s11 }
 0x400   : > { %2272 = vrot.lane.b32.xlu1 %v3562_v58, %s3253_s11 }
 0x402   : > { %2274 = vrot.lane.b32.xlu0 %v3545_v47, %s3253_s11 }
 0x404   : > { %2276 = vrot.lane.b32.xlu1 %v3555_v55, %s3253_s11 }
 0x406   : > { %2278 = vrot.lane.b32.xlu0 %v3582_v12, %s3253_s11 }
 0x408   : > { %2280 = vrot.lane.b32.xlu1 %v3594_v31, %s3253_s11 }
 0x40a   : > { %2282 = vrot.lane.b32.xlu0 %v3576_v8, %s3253_s11 }
 0x40c   : > { %2284 = vrot.lane.b32.xlu1 %v3587_v23, %s3253_s11 }
 0x40e   : > { %2318 = vrot.lane.b32.xlu0 %v3539_v42, %s3253_s11 }
 0x410   : > { %2320 = vrot.lane.b32.xlu1 %v3547_v49, %s3253_s11 }
 0x412   : > { %2322 = vrot.lane.b32.xlu0 %v3541_v44, %s3253_s11 }
 0x414   : > { %2324 = vrot.lane.b32.xlu1 %v3558_v57, %s3253_s11 }
 0x416   : > { %2326 = vrot.lane.b32.xlu0 %v3570_v1, %s3253_s11 }
 0x418   : > { %2328 = vrot.lane.b32.xlu1 %v3579_v10, %s3253_s11 }
 0x41a   : > { %2330 = vrot.lane.b32.xlu0 %v3572_v6, %s3253_s11 }
 0x41c   : > { %2332 = vrot.lane.b32.xlu1 %v3590_v26, %s3253_s11 }
 0x41e   : > { %2334 = vrot.lane.b32.xlu0 %v3602_v15, %s3253_s11 }
 0x420   : > { %2336 = vrot.lane.b32.xlu1 %v3608_v27, %s3253_s11  ;;  %v1078_v63 = vpop.permute.xlu0 %1077 }
 0x421   : > { %v3738_v13 = vadd.f32 %v1078_v63, %v3505_v18 }
 0x422   : > { %v1080_v36 = vpop.permute.xlu1 %1079  ;;  %2338 = vrot.lane.b32.xlu0 %v3604_v21, %s3253_s11 }
 0x423   : > { %v3741_v11 = vadd.f32 %v1080_v36, %v3513_v30 }
 0x424   : > { %2340 = vrot.lane.b32.xlu1 %v3612_v34, %s3253_s11  ;;  %v1082_v22 = vpop.permute.xlu0 %1081 }
 0x425   : > { %v2646_v38 = vpack.c.bf16 %v3741_v11, %v3738_v13  ;;  %v3756_v40 = vadd.f32 %v1082_v22, %v3499_v5 }
 0x426   : > { %v1084_v39 = vpop.permute.xlu1 %1083  ;;  %2342 = vrot.lane.b32.xlu0 %v3618_v43, %s3253_s11 }
 0x427   : > { %v3759_v41 = vadd.f32 %v1084_v39, %v3509_v25  ;;  %3021 = vmatprep.mubr.msk.bf16.mxu0 %vm3747_vm1, %v2646_v38 }
 0x428   : > { %2344 = vrot.lane.b32.xlu1 %v3624_v51, %s3253_s11  ;;  %v1086_v48 = vpop.permute.xlu0 %1085 }
 0x429   : > { %v2649_v52 = vpack.c.bf16 %v3759_v41, %v3756_v40  ;;  %v3768_v56 = vadd.f32 %v1086_v48, %v3524_v20 }
 0x42a   : > { %v1088_v53 = vpop.permute.xlu1 %1087 }
 0x42b   : > { %v3771_v46 = vadd.f32 %v1088_v53, %v3535_v37  ;;  %3022 = vmatmul.mubr.msk.bf16.vlgmr.msra.gmra.mrb[32].mxu0 %vm3747_vm1, %v2649_v52 }
 0x42c   : > { %v1090_v59 = vpop.permute.xlu0 %1089 }
 0x42d   : > { %v2652_v60 = vpack.c.bf16 %v3771_v46, %v3768_v56  ;;  %v3778_v62 = vadd.f32 %v1090_v59, %v3521_v14 }
 0x42e   : > { %v1092_v61 = vpop.permute.xlu1 %1091 }
 0x42f   : > { %v3781_v0 = vadd.f32 %v1092_v61, %v3531_v28  ;;  %3025 = vmatprep.mubr.msk.bf16.mxu0 %vm3747_vm1, %v2652_v60 }
 0x430   : > { %v1094_v2 = vpop.permute.xlu0 %1093 }
 0x431   : > { %v2655_v3 = vpack.c.bf16 %v3781_v0, %v3778_v62  ;;  %v3788_v9 = vadd.f32 %v1094_v2, %v3550_v50  ;;  %v1141_v2 = vmul.f32 %v3539_v42, %v3539_v42 }
 0x432   : > { %v1096_v7 = vpop.permute.xlu1 %1095 }
 0x433   : > { %v3791_v4 = vadd.f32 %v1096_v7, %v3562_v58  ;;  %3026 = vmatmul.mubr.msk.bf16.gmra.mrb[36].mxu0 %vm3747_vm1, %v2655_v3  ;;  %v1143_v3 = vmul.f32 %v3541_v44, %v3541_v44 }
 0x434   : > { %v1098_v16 = vpop.permute.xlu0 %1097 }
 0x435   : > { %v2658_v17 = vpack.c.bf16 %v3791_v4, %v3788_v9  ;;  %v3798_v24 = vadd.f32 %v1098_v16, %v3545_v47 }
 0x436   : > { %v1100_v19 = vpop.permute.xlu1 %1099 }
 0x437   : > { %v3801_v29 = vadd.f32 %v1100_v19, %v3555_v55  ;;  %3029 = vmatprep.mubr.msk.bf16.mxu0 %vm3747_vm1, %v2658_v17  ;;  %v1142_v17 = vmul.f32 %v3547_v49, %v3547_v49  ;;  %v1145_v49 = vmul.f32 %v3570_v1, %v3570_v1 }
 0x438   : > { %v1102_v32 = vpop.permute.xlu0 %1101 }
 0x439   : > { %v2661_v35 = vpack.c.bf16 %v3801_v29, %v3798_v24  ;;  %v3808_v36 = vadd.f32 %v1102_v32, %v3582_v12  ;;  %v1144_v32 = vmul.f32 %v3558_v57, %v3558_v57  ;;  %v1147_v57 = vmul.f32 %v3572_v6, %v3572_v6 }
 0x43a   : > { %v1104_v63 = vpop.permute.xlu1 %1103 }
 0x43b   : > { %v3811_v22 = vadd.f32 %v1104_v63, %v3594_v31  ;;  %3030 = vmatmul.mubr.msk.bf16.gmra.mrb[40].mxu0 %vm3747_vm1, %v2661_v35 }
 0x43c   : > { %v1106_v38 = vpop.permute.xlu0 %1105 }
 0x43d   : > { %v2664_v39 = vpack.c.bf16 %v3811_v22, %v3808_v36  ;;  %v3818_v52 = vadd.f32 %v1106_v38, %v3576_v8 }
 0x43e   : > { %v1108_v48 = vpop.permute.xlu1 %1107 }
 0x43f   : > { %v3821_v53 = vadd.f32 %v1108_v48, %v3587_v23  ;;  %3033 = vmatprep.mubr.msk.bf16.mxu0 %vm3747_vm1, %v2664_v39 }
 0x440   : > { %v1190_v59 = vpop.permute.xlu0 %1189 }
 0x441   : > { %v2667_v60 = vpack.c.bf16 %v3821_v53, %v3818_v52  ;;  %v1237_v16 = vadd.f32 %v1190_v59, %v1141_v2 }
 0x442   : > { %v1192_v61 = vpop.permute.xlu1 %1191 }
 0x443   : > { %3034 = vmatmul.mubr.msk.bf16.gmra.mrb[44].mxu0 %vm3747_vm1, %v2667_v60  ;;  %v1238_v63 = vadd.f32 %v1192_v61, %v1142_v17  ;;  %v1253_v33 = vsub.f32 %v1237_v16, %v3505_v18  ;;  %v1148_v18 = vmul.f32 %v3590_v26, %v3590_v26  ;;  %v1151_v26 = vmul.f32 %v3604_v21, %v3604_v21 }
 0x444   : > { %v1194_v7 = vpop.permute.xlu0 %1193 }
 0x445   : > { %v1239_v19 = vadd.f32 %v1194_v7, %v1143_v3  ;;  %v1254_v59 = vsub.f32 %v1238_v63, %v3513_v30  ;;  %v2603_v61 = vadd.f32 -0.5, %v1253_v33 }
 0x446   : > { %v1196_v35 = vpop.permute.xlu1 %1195 }
 0x447   : > { %v1255_v38 = vsub.f32 %v1239_v19, %v3499_v5  ;;  %v1240_v42 = vadd.f32 %v1196_v35, %v1144_v32  ;;  %v2604_v30 = vadd.f32 -0.5, %v1254_v59 }
 0x448   : > { %v1198_v39 = vpop.permute.xlu0 %1197 }
 0x449   : > { %v2605_v48 = vadd.f32 -0.5, %v1255_v38  ;;  %v1256_v44 = vsub.f32 %v1240_v42, %v3509_v25  ;;  %v1241_v3 = vadd.f32 %v1198_v39, %v1145_v49 }
 0x44a   : > { %v1200_v60 = vpop.permute.xlu1 %1199 }
 0x44b   : > { %v2606_v2 = vadd.f32 -0.5, %v1256_v44  ;;  %1305 = vrot.lane.b32.xlu0 %v2605_v48, %s3251_s9  ;;  %v1257_v19 = vsub.f32 %v1241_v3, %v3524_v20 }
 0x44c   : > { %v1202_v5 = vpop.permute.xlu0 %1201 }
 0x44d   : > { %v1243_v7 = vadd.f32 %v1202_v5, %v1147_v57  ;;  %1307 = vrot.lane.b32.xlu1 %v2606_v2, %s3251_s9  ;;  %v2607_v38 = vadd.f32 -0.5, %v1257_v19 }
 0x44e   : > { %v1204_v25 = vpop.permute.xlu1 %1203 }
 0x44f   : > { %v1259_v16 = vsub.f32 %v1243_v7, %v3521_v14  ;;  %v1244_v17 = vadd.f32 %v1204_v25, %v1148_v18  ;;  %1301 = vrot.lane.b32.xlu0 %v2603_v61, %s3251_s9  ;;  %v1146_v14 = vmul.f32 %v3579_v10, %v3579_v10  ;;  %v1153_v7 = vmul.f32 %v3618_v43, %v3618_v43  ;;  %v3187_v43 = vld [vmem:[%s4322_s1 + $0x148] sm:$0xff]  }
 0x450   : > { %v1206_v1 = vpop.permute.xlu0 %1205 }
 0x451   : > { %v2609_v6 = vadd.f32 -0.5, %v1259_v16  ;;  %1303 = vrot.lane.b32.xlu1 %v2604_v30, %s3251_s9  ;;  %v1260_v35 = vsub.f32 %v1244_v17, %v3531_v28  ;;  %v1242_v39 = vadd.f32 %v1200_v60, %v1146_v14  ;;  %v1149_v28 = vmul.f32 %v3602_v15, %v3602_v15 }
 0x452   : > { %v1208_v32 = vpop.permute.xlu1 %1207  ;;  %v1152_v15 = vmul.f32 %v3612_v34, %v3612_v34  ;;  %v1155_v34 = vmul.f32 %v3620_v45, %v3620_v45 }
 0x453   : > { %1313 = vrot.lane.b32.xlu0 %v2609_v6, %s3251_s9  ;;  %v2610_v33 = vadd.f32 -0.5, %v1260_v35  ;;  %v1245_v48 = vadd.f32 %v1206_v1, %v1149_v28  ;;  %v1258_v10 = vsub.f32 %v1242_v39, %v3535_v37  ;;  %v1150_v37 = vmul.f32 %v3608_v27, %v3608_v27  ;;  %v3193_v39 = vld [vmem:[%s4322_s1 + $0x178] sm:$0xff]  }
 0x454   : > { %v1210_v63 = vpop.permute.xlu0 %1209 }
 0x455   : > { %v1247_v42 = vadd.f32 %v1210_v63, %v1151_v26  ;;  %2194 = vrot.lane.b32.xlu1 %v3756_v40, %s3254_s13  ;;  %v1261_v40 = vsub.f32 %v1245_v48, %v3550_v50  ;;  %v2608_v2 = vadd.f32 -0.5, %v1258_v10  ;;  %v1246_v50 = vadd.f32 %v1208_v32, %v1150_v37  ;;  %v3189_v63 = vld [vmem:[%s4322_s1 + $0x158] sm:$0xff]  }
 0x456   : > { %v1212_v20 = vpop.permute.xlu1 %1211 }
 0x457   : > { %1309 = vrot.lane.b32.xlu0 %v2607_v38, %s3251_s9  ;;  %v1263_v21 = vsub.f32 %v1247_v42, %v3545_v47  ;;  %v1248_v47 = vadd.f32 %v1212_v20, %v1152_v15  ;;  %v2611_v57 = vadd.f32 -0.5, %v1261_v40  ;;  %v1262_v3 = vsub.f32 %v1246_v50, %v3562_v58 }
 0x458   : > { %v1214_v44 = vpop.permute.xlu0 %1213 }
 0x459   : > { %1315 = vrot.lane.b32.xlu1 %v2610_v33, %s3251_s9  ;;  %v2613_v60 = vadd.f32 -0.5, %v1263_v21  ;;  %v1249_v25 = vadd.f32 %v1214_v44, %v1153_v7  ;;  %v2612_v58 = vadd.f32 -0.5, %v1262_v3 }
 0x45a   : > { %v1216_v59 = vpop.permute.xlu1 %1215 }
 0x45b   : > { %2192 = vrot.lane.b32.xlu0 %v3741_v11, %s3254_s13  ;;  %v1264_v11 = vsub.f32 %v1248_v47, %v3555_v55  ;;  %v3186_v55 = vld [vmem:[%s4322_s1 + $0x140] sm:$0xff]  }
 0x45c   : > { %v1218_v49 = vpop.permute.xlu0 %1217  ;;  %3037 = vmatprep.subr.bf16.mxu1 %v3186_v55 }
 0x45d   : > { %2190 = vrot.lane.b32.xlu1 %v3738_v13, %s3254_s13  ;;  %v1251_v13 = vadd.f32 %v1218_v49, %v1155_v34  ;;  %v2614_v27 = vadd.f32 -0.5, %v1264_v11  ;;  %3038 = vmatpush3.bf16.msra.mxu1 %v3186_v55 }
 0x45e   : > { %v1220_v5 = vpop.permute.xlu1 %1219  ;;  %3039 = vmatprep.subr.bf16.mxu1 %v3187_v43 }
 0x45f   : > { %1321 = vrot.lane.b32.xlu0 %v2613_v60, %s3251_s9  ;;  %v1267_v30 = vsub.f32 %v1251_v13, %v3576_v8  ;;  %v1156_v8 = vmul.f32 %v3628_v54, %v3628_v54 }
 0x460   : > { %v3882_v61 = vpop.permute.xlu0 %2254 }
 0x461   : > { %1311 = vrot.lane.b32.xlu1 %v2608_v2, %s3251_s9  ;;  %v2617_v16 = vadd.f32 -0.5, %v1267_v30  ;;  %v1252_v1 = vadd.f32 %v1220_v5, %v1156_v8  ;;  %3040 = vmatpush3.bf16.msra.mxu1 %v3187_v43 }
 0x462   : > { %v3889_v18 = vpop.permute.xlu1 %2256 }
 0x463   : > { %1317 = vrot.lane.b32.xlu0 %v2611_v57, %s3251_s9  ;;  %v1268_v35 = vsub.f32 %v1252_v1, %v3587_v23  ;;  %v3190_v23 = vld [vmem:[%s4322_s1 + $0x160] sm:$0xff]  }
 0x465   : > { %2196 = vrot.lane.b32.xlu1 %v3759_v41, %s3254_s13  ;;  %v3898_v41 = vpop.permute.xlu0 %2258 }
 0x466   : > { %v3908_v17 = vpop.permute.xlu1 %2260 }
 0x467   : > { %2202 = vrot.lane.b32.xlu0 %v3778_v62, %s3254_s13  ;;  %v1265_v62 = vsub.f32 %v1249_v25, %v3582_v12  ;;  %v1154_v12 = vmul.f32 %v3624_v51, %v3624_v51 }
 0x469   : > { %1323 = vrot.lane.b32.xlu1 %v2614_v27, %s3251_s9  ;;  %v2615_v19 = vadd.f32 -0.5, %v1265_v62  ;;  %v3917_v6 = vpop.permute.xlu0 %2262  ;;  %v1250_v32 = vadd.f32 %v1216_v59, %v1154_v12 }
 0x46a   : > { %v3922_v26 = vpop.permute.xlu1 %2264 }
 0x46b   : > { %2198 = vrot.lane.b32.xlu0 %v3768_v56, %s3254_s13  ;;  %v3188_v56 = vld [vmem:[%s4322_s1 + $0x150] sm:$0xff]   ;;  %v1266_v51 = vsub.f32 %v1250_v32, %v3594_v31  ;;  %v3191_v31 = vld [vmem:[%s4322_s1 + $0x168] sm:$0xff]  }
 0x46c   : > { %3041 = vmatprep.subr.bf16.mxu1 %v3188_v56 }
 0x46d   : > { %1319 = vrot.lane.b32.xlu1 %v2612_v58, %s3251_s9  ;;  %3042 = vmatpush3.bf16.msra.mxu1 %v3188_v56  ;;  %v3931_v38 = vpop.permute.xlu0 %2266 }
 0x46e   : > { %3043 = vmatprep.subr.bf16.mxu1 %v3189_v63  ;;  %v3938_v14 = vpop.permute.xlu1 %2268 }
 0x46f   : > { %1329 = vrot.lane.b32.xlu0 %v2617_v16, %s3251_s9 }
 0x471   : > { %2204 = vrot.lane.b32.xlu1 %v3781_v0, %s3254_s13  ;;  %v2618_v0 = vadd.f32 -0.5, %v1268_v35  ;;  %3044 = vmatpush3.bf16.msra.mxu1 %v3189_v63 }
 0x472   : > { %3045 = vmatprep.subr.bf16.mxu1 %v3190_v23  ;;  %v3949_v42 = vpop.permute.xlu1 %2272 }
 0x473   : > { %1325 = vrot.lane.b32.xlu0 %v2615_v19, %s3251_s9 }
 0x475   : > { %2200 = vrot.lane.b32.xlu1 %v3771_v46, %s3254_s13  ;;  %v2616_v46 = vadd.f32 -0.5, %v1266_v51  ;;  %3046 = vmatpush3.bf16.msra.mxu1 %v3190_v23 }
 0x476   : > { %3047 = vmatprep.subr.bf16.mxu1 %v3191_v31 }
 0x477   : > { %2210 = vrot.lane.b32.xlu0 %v3798_v24, %s3254_s13  ;;  %v3946_v24 = vpop.permute.xlu0 %2270 }
 0x479   : > { %1331 = vrot.lane.b32.xlu1 %v2618_v0, %s3251_s9  ;;  %3048 = vmatpush3.bf16.msra.mxu1 %v3191_v31 }
 0x47b   : > { %2206 = vrot.lane.b32.xlu0 %v3788_v9, %s3254_s13  ;;  %v3192_v9 = vld [vmem:[%s4322_s1 + $0x170] sm:$0xff]   ;;  %v3958_v20 = vpop.permute.xlu0 %2274 }
 0x47c   : > { %3049 = vmatprep.subr.bf16.mxu1 %v3192_v9 }
 0x47d   : > { %1327 = vrot.lane.b32.xlu1 %v2616_v46, %s3251_s9  ;;  %3050 = vmatpush3.bf16.msra.mxu1 %v3192_v9 }
 0x47e   : > { %3051 = vmatprep.subr.bf16.mxu1 %v3193_v39 }
 0x47f   : > { %2218 = vrot.lane.b32.xlu0 %v3818_v52, %s3254_s13  ;;  %v3965_v52 = vpop.permute.xlu1 %2276  ;;  %v3969_v33 = vpop.permute.xlu0 %2278 }
 0x481   : > { %2212 = vrot.lane.b32.xlu1 %v3801_v29, %s3254_s13  ;;  %3052 = vmatpush3.bf16.msra.mxu1 %v3193_v39 }
 0x483   : > { %2214 = vrot.lane.b32.xlu0 %v3808_v36, %s3254_s13  ;;  %v3973_v29 = vpop.permute.xlu1 %2280  ;;  %v3977_v36 = vpop.permute.xlu0 %2282 }
 0x485   : > { %2208 = vrot.lane.b32.xlu1 %v3791_v4, %s3254_s13 }
 0x487   : > { %v3979_v28 = vpop.permute.xlu1 %2284  ;;  %v3981_v48 = vpop.permute.xlu0 %2318 }
 0x489   : > { %2220 = vrot.lane.b32.xlu1 %v3821_v53, %s3254_s13 }
 0x48b   : > { %v3983_v21 = vpop.permute.xlu1 %2320  ;;  %v3985_v4 = vpop.permute.xlu0 %2322 }
 0x48d   : > { %2216 = vrot.lane.b32.xlu1 %v3811_v22, %s3254_s13 }
 0x48f   : > { %v3987_v44 = vpop.permute.xlu1 %2324  ;;  %v3989_v10 = vpop.permute.xlu0 %2326 }
 0x493   : > { %v3991_v53 = vpop.permute.xlu1 %2328  ;;  %v3993_v59 = vpop.permute.xlu0 %2330 }
 0x497   : > { %v3995_v40 = vpop.permute.xlu1 %2332  ;;  %v3997_v22 = vpop.permute.xlu0 %2334 }
 0x49b   : > { %v3999_v60 = vpop.permute.xlu1 %2336  ;;  %v4001_v15 = vpop.permute.xlu0 %2338 }
 0x49f   : > { %v4003_v2 = vpop.permute.xlu1 %2340  ;;  %v4005_v47 = vpop.permute.xlu0 %2342 }
 0x4a3   : > { %v4007_v49 = vpop.permute.xlu1 %2344 }
 0x4a4   : > { %4327 = vst [vmem:[#allocation2_spill] sm:$0xff] %v4007_v49 }
 0x4bd   : > { %v1306_v57 = vpop.permute.xlu0 %1305 }
 0x4be   : > { %v1356_v37 = vsel %vm1349_vm0, %v1306_v57, 0.0 }
 0x4bf   : > { %v1308_v5 = vpop.permute.xlu1 %1307  ;;  %1357 = vadd.xlane.f32.xlu0 %v1356_v37 }
 0x4c0   : > { %v1359_v27 = vsel %vm1349_vm0, %v1308_v5, 0.0 }
 0x4c1   : > { %v1302_v50 = vpop.permute.xlu0 %1301 }
 0x4c2   : > { %v1350_v11 = vsel %vm1349_vm0, %v1302_v50, 0.0 }
 0x4c3   : > { %v1304_v34 = vpop.permute.xlu1 %1303  ;;  %1351 = vadd.xlane.f32.xlu0 %v1350_v11 }
 0x4c4   : > { %v1353_v13 = vsel %vm1349_vm0, %v1304_v34, 0.0 }
 0x4c5   : > { %1354 = vadd.xlane.f32.xlu1 %v1353_v13  ;;  %v1314_v3 = vpop.permute.xlu0 %1313 }
 0x4c6   : > { %v1368_v55 = vsel %vm1349_vm0, %v1314_v3, 0.0 }
 0x4c7   : > { %v4013_v7 = vpop.permute.xlu1 %2194  ;;  %1360 = vadd.xlane.f32.xlu0 %v1359_v27  ;;  %v4046_v27 = vld [vmem:[%s4323_s2 + $0x4] ss:$0 sm:$0xff] }
 0x4c9   : > { %1369 = vadd.xlane.f32.xlu1 %v1368_v55  ;;  %v1310_v25 = vpop.permute.xlu0 %1309 }
 0x4ca   : > { %v1362_v58 = vsel %vm1349_vm0, %v1310_v25, 0.0 }
 0x4cb   : > { %v1316_v30 = vpop.permute.xlu1 %1315 }
 0x4cc   : > { %v1371_v43 = vsel %vm1349_vm0, %v1316_v30, 0.0 }
 0x4cd   : > { %1372 = vadd.xlane.f32.xlu0 %v1371_v43  ;;  %1363 = vadd.xlane.f32.xlu1 %v1362_v58  ;;  %v4018_v62 = vpop.permute.xlu0 %2192 }
 0x4cf   : > { %v4020_v16 = vpop.permute.xlu1 %2190 }
 0x4d1   : > { %v1322_v8 = vpop.permute.xlu0 %1321 }
 0x4d2   : > { %v1380_v1 = vsel %vm1349_vm0, %v1322_v8, 0.0 }
 0x4d3   : > { %v1312_v56 = vpop.permute.xlu1 %1311  ;;  %1381 = vadd.xlane.f32.xlu1 %v1380_v1 }
 0x4d4   : > { %v1365_v19 = vsel %vm1349_vm0, %v1312_v56, 0.0 }
 0x4d5   : > { %1366 = vadd.xlane.f32.xlu0 %v1365_v19  ;;  %v1318_v12 = vpop.permute.xlu0 %1317  ;;  %v3195_v19 = vld [vmem:[%s4322_s1 + $0x188] sm:$0xff]  }
 0x4d6   : > { %v1374_v32 = vsel %vm1349_vm0, %v1318_v12, 0.0 }
 0x4d7   : > { %v4025_v35 = vpop.permute.xlu1 %2196  ;;  %1375 = vadd.xlane.f32.xlu1 %v1374_v32 }
 0x4d9   : > { %v4027_v63 = vpop.permute.xlu0 %2202 }
 0x4db   : > { %v1324_v51 = vpop.permute.xlu1 %1323 }
 0x4dc   : > { %v1383_v0 = vsel %vm1349_vm0, %v1324_v51, 0.0 }
 0x4dd   : > { %1384 = vadd.xlane.f32.xlu0 %v1383_v0  ;;  %v4030_v23 = vpop.permute.xlu0 %2198 }
 0x4df   : > { %v1320_v46 = vpop.permute.xlu1 %1319 }
 0x4e0   : > { %v1377_v31 = vsel %vm1349_vm0, %v1320_v46, 0.0 }
 0x4e1   : > { %1378 = vadd.xlane.f32.xlu0 %v1377_v31  ;;  %v1330_v9 = vpop.permute.xlu0 %1329 }
 0x4e2   : > { %v1392_v39 = vsel %vm1349_vm0, %v1330_v9, 0.0 }
 0x4e3   : > { %v4034_v57 = vpop.permute.xlu1 %2204  ;;  %1393 = vadd.xlane.f32.xlu1 %v1392_v39  ;;  %v3196_v39 = vld [vmem:[%s4322_s1 + $0x190] sm:$0xff]  }
 0x4e5   : > { %v1326_v37 = vpop.permute.xlu0 %1325 }
 0x4e6   : > { %v1386_v5 = vsel %vm1349_vm0, %v1326_v37, 0.0 }
 0x4e7   : > { %v4037_v50 = vpop.permute.xlu1 %2200  ;;  %1387 = vadd.xlane.f32.xlu1 %v1386_v5 }
 0x4eb   : > { %v1332_v11 = vpop.permute.xlu1 %1331 }
 0x4ec   : > { %v1395_v34 = vsel %vm1349_vm0, %v1332_v11, 0.0 }
 0x4ed   : > { %1396 = vadd.xlane.f32.xlu0 %v1395_v34 }
 0x4ef   : > { %v1328_v13 = vpop.permute.xlu1 %1327 }
 0x4f0   : > { %v1389_v3 = vsel %vm1349_vm0, %v1328_v13, 0.0 }
 0x4f1   : > { %1390 = vadd.xlane.f32.xlu0 %v1389_v3 }
 0x4f8   : > { %2348 = vrot.lane.b32.xlu1 %v3628_v54, %s3253_s11  ;;  %v3194_v54 = vld [vmem:[%s4322_s1 + $0x180] sm:$0xff]  }
 0x4f9   : > { %3069 = vmatprep.subr.bf16.mxu0 %v3194_v54 }
 0x4fa   : > { %3070 = vmatpush3.bf16.msra.mxu0 %v3194_v54  ;;  %v3198_v54 = vld [vmem:[%s4322_s1 + $0x1a0] sm:$0xff]  }
 0x4fb   : > { %3071 = vmatprep.subr.bf16.mxu0 %v3195_v19 }
 0x4fe   : > { %v3023_v55 = vpop.f32.mrb[32].mxu0  ;;  %3072 = vmatpush3.bf16.msra.mxu0 %v3195_v19 }
 0x4ff   : > { %v1538_v25 = vadd.f32 %v3023_v55, %v4046_v27  ;;  %v1529_v30 = vpop.f32.mrb[33].mxu0  ;;  %3073 = vmatprep.subr.bf16.mxu0 %v3196_v39 }
 0x500   : > { %v1530_v58 = vadd.f32 %v4046_v27, %v1529_v30  ;;  %v3024_v43 = vpop.f32.mrb[34].mxu0 }
 0x501   : > { %v1541_v8 = vadd.f32 %v3024_v43, %v4046_v27  ;;  %v1532_v1 = vpop.f32.mrb[35].mxu0  ;;  %v1594_v12 = vmax.f32 %v1538_v25, 0.0  ;;  %v3197_v25 = vld [vmem:[%s4322_s1 + $0x198] sm:$0xff]  }
 0x502   : > { %v1533_v56 = vadd.f32 %v4046_v27, %v1532_v1  ;;  %v1592_v51 = vmax.f32 %v1530_v58, 0.0  ;;  %3074 = vmatpush3.bf16.msra.mxu0 %v3196_v39 }
 0x503   : > { %v1595_v32 = vmax.f32 %v1541_v8, 0.0  ;;  %3075 = vmatprep.subr.bf16.mxu0 %v3197_v25 }
 0x504   : > { %v1593_v0 = vmax.f32 %v1533_v56, 0.0 }
 0x505   : > { %v1609_v46 = vpack.c.bf16 %v1595_v32, %v1594_v12 }
 0x506   : > { %v1608_v31 = vpack.c.bf16 %v1593_v0, %v1592_v51  ;;  %v3027_v9 = vpop.f32.mrb[36].mxu0  ;;  %3076 = vmatpush3.bf16.msra.mxu0 %v3197_v25 }
 0x507   : > { %v1554_v37 = vadd.f32 %v3027_v9, %v4046_v27  ;;  %v1545_v5 = vpop.f32.mrb[37].mxu0  ;;  %2346 = vrot.lane.b32.xlu0 %v3620_v45, %s3253_s11  ;;  %3077 = vmatprep.subr.bf16.mxu0 %v3198_v54  ;;  %v3199_v9 = vld [vmem:[%s4322_s1 + $0x1a8] sm:$0xff]  }
 0x508   : > { %v1546_v11 = vadd.f32 %v4046_v27, %v1545_v5  ;;  %v3028_v34 = vpop.f32.mrb[38].mxu0  ;;  %3053 = vmatprep.mubr.bf16.mxu1 %v1608_v31 }
 0x509   : > { %v1557_v13 = vadd.f32 %v3028_v34, %v4046_v27  ;;  %v1548_v3 = vpop.f32.mrb[39].mxu0  ;;  %3054 = vmatmul.mubr.bf16.vlgmr.msra.gmra.mrb[32].mxu1 %v1609_v46  ;;  %v1598_v30 = vmax.f32 %v1554_v37, 0.0 }
 0x50a   : > { %v1549_v55 = vadd.f32 %v4046_v27, %v1548_v3  ;;  %v1596_v43 = vmax.f32 %v1546_v11, 0.0  ;;  %3078 = vmatpush3.bf16.msra.mxu0 %v3198_v54 }
 0x50b   : > { %v1599_v58 = vmax.f32 %v1557_v13, 0.0  ;;  %3079 = vmatprep.subr.bf16.mxu0 %v3199_v9 }
 0x50c   : > { %v1597_v45 = vmax.f32 %v1549_v55, 0.0 }
 0x50d   : > { %v1611_v8 = vpack.c.bf16 %v1599_v58, %v1598_v30 }
 0x50e   : > { %v1610_v1 = vpack.c.bf16 %v1597_v45, %v1596_v43  ;;  %v3031_v56 = vpop.f32.mrb[40].mxu0  ;;  %3080 = vmatpush3.bf16.msra.mxu0 %v3199_v9  ;;  %v3205_v9 = vld [vmem:[%s4322_s1 + $0x1d8] sm:$0xff]  }
 0x50f   : > { %v1570_v19 = vadd.f32 %v3031_v56, %v4046_v27  ;;  %v1561_v12 = vpop.f32.mrb[41].mxu0 }
 0x510   : > { %v1562_v32 = vadd.f32 %v4046_v27, %v1561_v12  ;;  %v3032_v51 = vpop.f32.mrb[42].mxu0  ;;  %3057 = vmatprep.mubr.bf16.mxu1 %v1610_v1 }
 0x511   : > { %v1573_v0 = vadd.f32 %v3032_v51, %v4046_v27  ;;  %v1564_v46 = vpop.f32.mrb[43].mxu0  ;;  %3058 = vmatmul.mubr.bf16.gmra.mrb[36].mxu1 %v1611_v8  ;;  %v1602_v39 = vmax.f32 %v1570_v19, 0.0  ;;  %v3200_v51 = vld [vmem:[%s4322_s1 + $0x1b0] sm:$0xff]  }
 0x512   : > { %v1565_v31 = vadd.f32 %v4046_v27, %v1564_v46  ;;  %v1600_v5 = vmax.f32 %v1562_v32, 0.0  ;;  %3081 = vmatprep.subr.bf16.mxu0 %v3200_v51  ;;  %v3203_v46 = vld [vmem:[%s4322_s1 + $0x1c8] sm:$0xff]  }
 0x513   : > { %v1603_v37 = vmax.f32 %v1573_v0, 0.0  ;;  %3082 = vmatpush3.bf16.msra.mxu0 %v3200_v51  ;;  %v3201_v0 = vld [vmem:[%s4322_s1 + $0x1b8] sm:$0xff]  }
 0x514   : > { %v1601_v11 = vmax.f32 %v1565_v31, 0.0  ;;  %3083 = vmatprep.subr.bf16.mxu0 %v3201_v0  ;;  %v3204_v31 = vld [vmem:[%s4322_s1 + $0x1d0] sm:$0xff]  }
 0x515   : > { %v1613_v34 = vpack.c.bf16 %v1603_v37, %v1602_v39  ;;  %v3206_v39 = vld [vmem:[%s4322_s1 + $0x1e0] sm:$0xff]   ;;  %v3207_v37 = vld [vmem:[%s4322_s1 + $0x1e8] sm:$0xff]  }
 0x516   : > { %v1612_v13 = vpack.c.bf16 %v1601_v11, %v1600_v5  ;;  %v3035_v3 = vpop.f32.mrb[44].mxu0  ;;  %v2686_v5 = vld [vmem:[%s4323_s2 + $0x5] ss:$0 sm:$0xff] }
 0x517   : > { %v1586_v55 = vadd.f32 %v3035_v3, %v4046_v27  ;;  %v1577_v30 = vpop.f32.mrb[45].mxu0  ;;  %3084 = vmatpush3.bf16.msra.mxu0 %v3201_v0 }
 0x518   : > { %v1578_v25 = vadd.f32 %v4046_v27, %v1577_v30  ;;  %v3036_v58 = vpop.f32.mrb[46].mxu0  ;;  %3061 = vmatprep.mubr.bf16.mxu1 %v1612_v13 }
 0x519   : > { %v1589_v43 = vadd.f32 %v3036_v58, %v4046_v27  ;;  %v1580_v45 = vpop.f32.mrb[47].mxu0  ;;  %3062 = vmatmul.mubr.bf16.gmra.mrb[40].mxu1 %v1613_v34  ;;  %v1606_v1 = vmax.f32 %v1586_v55, 0.0 }
 0x51a   : > { %v1581_v8 = vadd.f32 %v4046_v27, %v1580_v45  ;;  %v1604_v54 = vmax.f32 %v1578_v25, 0.0  ;;  %v3202_v27 = vld [vmem:[%s4322_s1 + $0x1c0] sm:$0xff]  }
 0x51b   : > { %v1607_v56 = vmax.f32 %v1589_v43, 0.0  ;;  %3101 = vmatprep.subr.bf16.mxu1 %v3202_v27 }
 0x51c   : > { %v1605_v19 = vmax.f32 %v1581_v8, 0.0  ;;  %3102 = vmatpush3.bf16.msra.mxu1 %v3202_v27 }
 0x51d   : > { %v1615_v12 = vpack.c.bf16 %v1607_v56, %v1606_v1  ;;  %3103 = vmatprep.subr.bf16.mxu1 %v3203_v46 }
 0x51e   : > { %v1614_v32 = vpack.c.bf16 %v1605_v19, %v1604_v54 }
 0x520   : > { %3065 = vmatprep.mubr.bf16.mxu1 %v1614_v32  ;;  %3104 = vmatpush3.bf16.msra.mxu1 %v3203_v46 }
 0x521   : > { %3066 = vmatmul.mubr.bf16.gmra.mrb[44].mxu1 %v1615_v12  ;;  %3105 = vmatprep.subr.bf16.mxu1 %v3204_v31 }
 0x524   : > { %3106 = vmatpush3.bf16.msra.mxu1 %v3204_v31 }
 0x525   : > { %3107 = vmatprep.subr.bf16.mxu1 %v3205_v9 }
 0x528   : > { %3108 = vmatpush3.bf16.msra.mxu1 %v3205_v9 }
 0x529   : > { %3109 = vmatprep.subr.bf16.mxu1 %v3206_v39 }
 0x52c   : > { %3110 = vmatpush3.bf16.msra.mxu1 %v3206_v39 }
 0x52d   : > { %3111 = vmatprep.subr.bf16.mxu1 %v3207_v37 }
 0x530   : > { %3112 = vmatpush3.bf16.msra.mxu1 %v3207_v37 }
 0x5dc   : > { %v3055_v11 = vpop.f32.mrb[32].mxu1 }
 0x5dd   : > { %v1732_v34 = vadd.f32 %v3055_v11, %v2686_v5  ;;  %v1723_v13 = vpop.f32.mrb[33].mxu1 }
 0x5de   : > { %v1724_v3 = vadd.f32 %v2686_v5, %v1723_v13  ;;  %v3056_v55 = vpop.f32.mrb[34].mxu1 }
 0x5df   : > { %v1735_v30 = vadd.f32 %v3056_v55, %v2686_v5  ;;  %v1726_v25 = vpop.f32.mrb[35].mxu1  ;;  %v1788_v43 = vmax.f32 %v1732_v34, 0.0 }
 0x5e0   : > { %v1727_v58 = vadd.f32 %v2686_v5, %v1726_v25  ;;  %v1786_v8 = vmax.f32 %v1724_v3, 0.0 }
 0x5e1   : > { %v1789_v45 = vmax.f32 %v1735_v30, 0.0 }
 0x5e2   : > { %v1787_v1 = vmax.f32 %v1727_v58, 0.0 }
 0x5e3   : > { %v1803_v56 = vpack.c.bf16 %v1789_v45, %v1788_v43 }
 0x5e4   : > { %v1802_v54 = vpack.c.bf16 %v1787_v1, %v1786_v8  ;;  %v3059_v19 = vpop.f32.mrb[36].mxu1 }
 0x5e5   : > { %v1748_v12 = vadd.f32 %v3059_v19, %v2686_v5  ;;  %v1739_v32 = vpop.f32.mrb[37].mxu1 }
 0x5e6   : > { %v1740_v51 = vadd.f32 %v2686_v5, %v1739_v32  ;;  %v3060_v0 = vpop.f32.mrb[38].mxu1  ;;  %3085 = vmatprep.mubr.bf16.mxu0 %v1802_v54 }
 0x5e7   : > { %v1751_v27 = vadd.f32 %v3060_v0, %v2686_v5  ;;  %v1742_v46 = vpop.f32.mrb[39].mxu1  ;;  %3086 = vmatmul.mubr.bf16.vlgmr.msra.gmra.mrb[48].mxu0 %v1803_v56  ;;  %v1792_v9 = vmax.f32 %v1748_v12, 0.0 }
 0x5e8   : > { %v1743_v31 = vadd.f32 %v2686_v5, %v1742_v46  ;;  %v1790_v37 = vmax.f32 %v1740_v51, 0.0 }
 0x5e9   : > { %v1793_v39 = vmax.f32 %v1751_v27, 0.0 }
 0x5ea   : > { %v1791_v11 = vmax.f32 %v1743_v31, 0.0 }
 0x5eb   : > { %v1805_v34 = vpack.c.bf16 %v1793_v39, %v1792_v9 }
 0x5ec   : > { %v1804_v13 = vpack.c.bf16 %v1791_v11, %v1790_v37  ;;  %v3063_v3 = vpop.f32.mrb[40].mxu1 }
 0x5ed   : > { %v1764_v55 = vadd.f32 %v3063_v3, %v2686_v5  ;;  %v1755_v30 = vpop.f32.mrb[41].mxu1 }
 0x5ee   : > { %v1756_v25 = vadd.f32 %v2686_v5, %v1755_v30  ;;  %v3064_v58 = vpop.f32.mrb[42].mxu1  ;;  %3089 = vmatprep.mubr.bf16.mxu0 %v1804_v13 }
 0x5ef   : > { %v1767_v43 = vadd.f32 %v3064_v58, %v2686_v5  ;;  %v1758_v45 = vpop.f32.mrb[43].mxu1  ;;  %3090 = vmatmul.mubr.bf16.gmra.mrb[52].mxu0 %v1805_v34  ;;  %v1796_v1 = vmax.f32 %v1764_v55, 0.0  ;;  %v3209_v58 = vld [vmem:[%s4322_s1 + $0x1f8] sm:$0xff]  }
 0x5f0   : > { %v1759_v8 = vadd.f32 %v2686_v5, %v1758_v45  ;;  %v1794_v56 = vmax.f32 %v1756_v25, 0.0  ;;  %v3208_v25 = vld [vmem:[%s4322_s1 + $0x1f0] sm:$0xff]  }
 0x5f1   : > { %v1797_v54 = vmax.f32 %v1767_v43, 0.0  ;;  %3113 = vmatprep.subr.bf16.mxu1 %v3208_v25 }
 0x5f2   : > { %v1795_v19 = vmax.f32 %v1759_v8, 0.0  ;;  %3114 = vmatpush3.bf16.msra.mxu1 %v3208_v25 }
 0x5f3   : > { %v1807_v12 = vpack.c.bf16 %v1797_v54, %v1796_v1  ;;  %3115 = vmatprep.subr.bf16.mxu1 %v3209_v58 }
 0x5f4   : > { %v1806_v32 = vpack.c.bf16 %v1795_v19, %v1794_v56  ;;  %v3067_v51 = vpop.f32.mrb[44].mxu1 }
 0x5f5   : > { %v1780_v0 = vadd.f32 %v3067_v51, %v2686_v5  ;;  %v1771_v27 = vpop.f32.mrb[45].mxu1 }
 0x5f6   : > { %v1772_v46 = vadd.f32 %v2686_v5, %v1771_v27  ;;  %v3068_v31 = vpop.f32.mrb[46].mxu1  ;;  %3093 = vmatprep.mubr.bf16.mxu0 %v1806_v32  ;;  %3116 = vmatpush3.bf16.msra.mxu1 %v3209_v58 }
 0x5f7   : > { %v1783_v9 = vadd.f32 %v3068_v31, %v2686_v5  ;;  %v1774_v39 = vpop.f32.mrb[47].mxu1  ;;  %3094 = vmatmul.mubr.bf16.gmra.mrb[56].mxu0 %v1807_v12  ;;  %v1800_v11 = vmax.f32 %v1780_v0, 0.0 }
 0x5f8   : > { %v1775_v37 = vadd.f32 %v2686_v5, %v1774_v39  ;;  %v1798_v34 = vmax.f32 %v1772_v46, 0.0  ;;  %v2712_v5 = vld [vmem:[%s4323_s2 + $0x6] ss:$0 sm:$0xff] }
 0x5f9   : > { %v1801_v13 = vmax.f32 %v1783_v9, 0.0 }
 0x5fa   : > { %v1799_v3 = vmax.f32 %v1775_v37, 0.0 }
 0x5fb   : > { %v1809_v55 = vpack.c.bf16 %v1801_v13, %v1800_v11 }
 0x5fc   : > { %v1808_v30 = vpack.c.bf16 %v1799_v3, %v1798_v34 }
 0x5fe   : > { %3097 = vmatprep.mubr.bf16.mxu0 %v1808_v30 }
 0x5ff   : > { %3098 = vmatmul.mubr.bf16.gmra.mrb[60].mxu0 %v1809_v55 }
 0x6ba   : > { %v3087_v43 = vpop.f32.mrb[48].mxu0 }
 0x6bb   : > { %v1926_v45 = vadd.f32 %v3087_v43, %v2712_v5  ;;  %v1917_v8 = vpop.f32.mrb[49].mxu0 }
 0x6bc   : > { %v1918_v1 = vadd.f32 %v2712_v5, %v1917_v8  ;;  %v3088_v54 = vpop.f32.mrb[50].mxu0 }
 0x6bd   : > { %v1929_v56 = vadd.f32 %v3088_v54, %v2712_v5  ;;  %v1920_v19 = vpop.f32.mrb[51].mxu0  ;;  %v1982_v32 = vmax.f32 %v1926_v45, 0.0 }
 0x6be   : > { %v1921_v12 = vadd.f32 %v2712_v5, %v1920_v19  ;;  %v1980_v0 = vmax.f32 %v1918_v1, 0.0 }
 0x6bf   : > { %v1983_v51 = vmax.f32 %v1929_v56, 0.0 }
 0x6c0   : > { %v1981_v27 = vmax.f32 %v1921_v12, 0.0 }
 0x6c1   : > { %v1997_v46 = vpack.c.bf16 %v1983_v51, %v1982_v32 }
 0x6c2   : > { %v1996_v31 = vpack.c.bf16 %v1981_v27, %v1980_v0  ;;  %v3091_v9 = vpop.f32.mrb[52].mxu0 }
 0x6c3   : > { %v1942_v39 = vadd.f32 %v3091_v9, %v2712_v5  ;;  %v1933_v37 = vpop.f32.mrb[53].mxu0 }
 0x6c4   : > { %v1934_v11 = vadd.f32 %v2712_v5, %v1933_v37  ;;  %v3092_v13 = vpop.f32.mrb[54].mxu0  ;;  %3117 = vmatprep.mubr.bf16.mxu1 %v1996_v31 }
 0x6c5   : > { %v1945_v34 = vadd.f32 %v3092_v13, %v2712_v5  ;;  %v1936_v3 = vpop.f32.mrb[55].mxu0  ;;  %3118 = vmatmul.mubr.bf16.vlgmr.msra.gmra.mrb[48].mxu1 %v1997_v46  ;;  %v1986_v30 = vmax.f32 %v1942_v39, 0.0 }
 0x6c6   : > { %v1937_v55 = vadd.f32 %v2712_v5, %v1936_v3  ;;  %v1984_v58 = vmax.f32 %v1934_v11, 0.0 }
 0x6c7   : > { %v1987_v25 = vmax.f32 %v1945_v34, 0.0 }
 0x6c8   : > { %v1985_v43 = vmax.f32 %v1937_v55, 0.0 }
 0x6c9   : > { %v1999_v45 = vpack.c.bf16 %v1987_v25, %v1986_v30 }
 0x6ca   : > { %v1998_v8 = vpack.c.bf16 %v1985_v43, %v1984_v58  ;;  %v3095_v1 = vpop.f32.mrb[56].mxu0 }
 0x6cb   : > { %v1958_v54 = vadd.f32 %v3095_v1, %v2712_v5  ;;  %v1949_v56 = vpop.f32.mrb[57].mxu0 }
 0x6cc   : > { %v1950_v19 = vadd.f32 %v2712_v5, %v1949_v56  ;;  %v3096_v12 = vpop.f32.mrb[58].mxu0  ;;  %3121 = vmatprep.mubr.bf16.mxu1 %v1998_v8 }
 0x6cd   : > { %v1961_v32 = vadd.f32 %v3096_v12, %v2712_v5  ;;  %v1952_v51 = vpop.f32.mrb[59].mxu0  ;;  %3122 = vmatmul.mubr.bf16.gmra.mrb[52].mxu1 %v1999_v45  ;;  %v1990_v27 = vmax.f32 %v1958_v54, 0.0 }
 0x6ce   : > { %v1953_v0 = vadd.f32 %v2712_v5, %v1952_v51  ;;  %v1988_v46 = vmax.f32 %v1950_v19, 0.0  ;;  %v4120_v19 = vpop.permute.xlu0 %2210 }
 0x6cf   : > { %v1991_v31 = vmax.f32 %v1961_v32, 0.0  ;;  %v4124_v32 = vpop.permute.xlu1 %2212 }
 0x6d0   : > { %v1989_v9 = vmax.f32 %v1953_v0, 0.0 }
 0x6d1   : > { %v2001_v39 = vpack.c.bf16 %v1991_v31, %v1990_v27 }
 0x6d2   : > { %v2000_v37 = vpack.c.bf16 %v1989_v9, %v1988_v46  ;;  %v3099_v11 = vpop.f32.mrb[60].mxu0  ;;  %v4122_v12 = vpop.permute.xlu0 %2206 }
 0x6d3   : > { %v1974_v13 = vadd.f32 %v3099_v11, %v2712_v5  ;;  %v1965_v34 = vpop.f32.mrb[61].mxu0  ;;  %v4128_v0 = vpop.permute.xlu1 %2208 }
 0x6d4   : > { %v1966_v3 = vadd.f32 %v2712_v5, %v1965_v34  ;;  %v3100_v55 = vpop.f32.mrb[62].mxu0  ;;  %3125 = vmatprep.mubr.bf16.mxu1 %v2000_v37  ;;  %v4141_v34 = vld [vmem:[%s4323_s2 + $0x7] ss:$0 sm:$0xff] }
 0x6d5   : > { %v1977_v30 = vadd.f32 %v3100_v55, %v2712_v5  ;;  %v1968_v25 = vpop.f32.mrb[63].mxu0  ;;  %3126 = vmatmul.mubr.bf16.gmra.mrb[56].mxu1 %v2001_v39  ;;  %v1994_v43 = vmax.f32 %v1974_v13, 0.0 }
 0x6d6   : > { %v1969_v58 = vadd.f32 %v2712_v5, %v1968_v25  ;;  %v1992_v45 = vmax.f32 %v1966_v3, 0.0  ;;  %v4126_v51 = vpop.permute.xlu0 %2218 }
 0x6d7   : > { %v1995_v8 = vmax.f32 %v1977_v30, 0.0  ;;  %v4132_v5 = vpop.permute.xlu1 %2220 }
 0x6d8   : > { %v1993_v1 = vmax.f32 %v1969_v58, 0.0 }
 0x6d9   : > { %v2003_v54 = vpack.c.bf16 %v1995_v8, %v1994_v43 }
 0x6da   : > { %v2002_v56 = vpack.c.bf16 %v1993_v1, %v1992_v45  ;;  %v4130_v27 = vpop.permute.xlu0 %2214 }
 0x6db   : > { %v4134_v46 = vpop.permute.xlu1 %2216 }
 0x6dc   : > { %3129 = vmatprep.mubr.bf16.mxu1 %v2002_v56 }
 0x6dd   : > { %3130 = vmatmul.mubr.bf16.gmra.mrb[60].mxu1 %v2003_v54 }
 0x6de   : > { %v1358_v31 = vpop.xlane.xlu0 %1357 }
 0x6df   : > { %v1355_v39 = vpop.xlane.xlu1 %1354 }
 0x6e2   : > { %v1352_v9 = vpop.xlane.xlu0 %1351 }
 0x6e3   : > { %v1370_v11 = vpop.xlane.xlu1 %1369 }
 0x6e6   : > { %v1361_v37 = vpop.xlane.xlu0 %1360 }
 0x6e7   : > { %v1364_v54 = vpop.xlane.xlu1 %1363 }
 0x6ea   : > { %v4136_v13 = vpop.xlane.xlu0 %1372 }
 0x6ee   : > { %v4144_v25 = vpop.xlane.xlu0 %1366 }
 0x6f2   : > { %v4168_v49 = vpop.xlane.xlu0 %1384 }
 0x798   : > { %v3119_v3 = vpop.f32.mrb[48].mxu1 }
 0x799   : > { %v2120_v55 = vadd.f32 %v3119_v3, %v4141_v34  ;;  %v2111_v30 = vpop.f32.mrb[49].mxu1 }
 0x79a   : > { %v2112_v58 = vadd.f32 %v4141_v34, %v2111_v30  ;;  %v3120_v43 = vpop.f32.mrb[50].mxu1 }
 0x79b   : > { %v2369_v8 = vsel %vm2366_vm2, %v2120_v55, %v4013_v7  ;;  %v2123_v45 = vadd.f32 %v3120_v43, %v4141_v34  ;;  %v2114_v1 = vpop.f32.mrb[51].mxu1 }
 0x79c   : > { %v2386_v56 = vsel %vm2383_vm3, %v2369_v8, %v3898_v41  ;;  %v2367_v7 = vsel %vm2366_vm2, %v2112_v58, %v4020_v16  ;;  %v2115_v3 = vadd.f32 %v4141_v34, %v2114_v1  ;;  %v1382_v58 = vpop.xlane.xlu1 %1381 }
 0x79d   : > { %v2403_v55 = vsel %vm2400_vm4, %v2386_v56, %v3985_v4  ;;  %v2384_v30 = vsel %vm2383_vm3, %v2367_v7, %v3882_v61  ;;  %v2370_v43 = vsel %vm2366_vm2, %v2123_v45, %v4025_v35  ;;  %v1379_v7 = vpop.xlane.xlu0 %1378 }
 0x79e   : > { %v2420_v41 = vsel %vm2417_vm5, %v2403_v55, %v1358_v31  ;;  %v2401_v8 = vsel %vm2400_vm4, %v2384_v30, %v3981_v48  ;;  %v2387_v16 = vsel %vm2383_vm3, %v2370_v43, %v3908_v17  ;;  %v2368_v4 = vsel %vm2366_vm2, %v2115_v3, %v4018_v62 }
 0x79f   : > { %2437 = vst.msk [vmem:[%s4155_s27 + $0x10] sm:$0xff] %vm2434_vm6, %v2420_v41  ;;  %v2418_v61 = vsel %vm2417_vm5, %v2401_v8, %v1352_v9  ;;  %v2404_v35 = vsel %vm2400_vm4, %v2387_v16, %v3987_v44  ;;  %v2385_v31 = vsel %vm2383_vm3, %v2368_v4, %v3889_v18 }
 0x7a0   : > { %2435 = vst.msk [vmem:[%s4155_s27] sm:$0xff] %vm2434_vm6, %v2418_v61  ;;  %v2421_v48 = vsel %vm2417_vm5, %v2404_v35, %v1361_v37  ;;  %v2402_v17 = vsel %vm2400_vm4, %v2385_v31, %v3983_v21  ;;  %v3123_v45 = vpop.f32.mrb[52].mxu1  ;;  %v1376_v41 = vpop.xlane.xlu1 %1375 }
 0x7a1   : > { %2438 = vst.msk [vmem:[%s4155_s27 + $0x18] sm:$0xff] %vm2434_vm6, %v2421_v48  ;;  %v2419_v62 = vsel %vm2417_vm5, %v2402_v17, %v1355_v39  ;;  %v2136_v9 = vadd.f32 %v3123_v45, %v4141_v34  ;;  %v2127_v1 = vpop.f32.mrb[53].mxu1  ;;  %v4224_v16 = vpop.xlane.xlu0 %1396 }
 0x7a2   : > { %2436 = vst.msk [vmem:[%s4155_s27 + $0x8] sm:$0xff] %vm2434_vm6, %v2419_v62  ;;  %v2128_v18 = vadd.f32 %v4141_v34, %v2127_v1  ;;  %v3124_v44 = vpop.f32.mrb[54].mxu1 }
 0x7a3   : > { %v2373_v37 = vsel %vm2366_vm2, %v2136_v9, %v4027_v63  ;;  %v2139_v56 = vadd.f32 %v3124_v44, %v4141_v34  ;;  %v2130_v21 = vpop.f32.mrb[55].mxu1 }
 0x7a4   : > { %v2390_v3 = vsel %vm2383_vm3, %v2373_v37, %v3931_v38  ;;  %v2371_v39 = vsel %vm2366_vm2, %v2128_v18, %v4030_v23  ;;  %v2131_v55 = vadd.f32 %v4141_v34, %v2130_v21 }
 0x7a5   : > { %v2407_v30 = vsel %vm2400_vm4, %v2390_v3, %v3993_v59  ;;  %v2388_v43 = vsel %vm2383_vm3, %v2371_v39, %v3917_v6  ;;  %v2374_v63 = vsel %vm2366_vm2, %v2139_v56, %v4034_v57  ;;  %v1391_v9 = vpop.xlane.xlu0 %1390 }
 0x7a6   : > { %v2424_v8 = vsel %vm2417_vm5, %v2407_v30, %v1370_v11  ;;  %v2405_v38 = vsel %vm2400_vm4, %v2388_v43, %v3989_v10  ;;  %v2391_v23 = vsel %vm2383_vm3, %v2374_v63, %v3938_v14  ;;  %v2372_v59 = vsel %vm2366_vm2, %v2131_v55, %v4037_v50 }
 0x7a7   : > { %2441 = vst.msk [vmem:[%s4155_s27 + $0x30] sm:$0xff] %vm2434_vm6, %v2424_v8  ;;  %v2422_v6 = vsel %vm2417_vm5, %v2405_v38, %v1364_v54  ;;  %v2408_v57 = vsel %vm2400_vm4, %v2391_v23, %v3995_v40  ;;  %v2389_v11 = vsel %vm2383_vm3, %v2372_v59, %v3922_v26  ;;  %v1394_v26 = vpop.xlane.xlu1 %1393  ;;  %v4328_v38 = vld [vmem:[#allocation2_spill] sm:$0xff] }
 0x7a8   : > { %2439 = vst.msk [vmem:[%s4155_s27 + $0x20] sm:$0xff] %vm2434_vm6, %v2422_v6  ;;  %v2425_v14 = vsel %vm2417_vm5, %v2408_v57, %v4136_v13  ;;  %v2406_v10 = vsel %vm2400_vm4, %v2389_v11, %v3991_v53  ;;  %v3127_v50 = vpop.f32.mrb[56].mxu1 }
 0x7a9   : > { %2442 = vst.msk [vmem:[%s4155_s27 + $0x38] sm:$0xff] %vm2434_vm6, %v2425_v14  ;;  %v2423_v54 = vsel %vm2417_vm5, %v2406_v10, %v4144_v25  ;;  %v2152_v40 = vadd.f32 %v3127_v50, %v4141_v34  ;;  %v2143_v4 = vpop.f32.mrb[57].mxu1  ;;  %v2347_v3 = vpop.permute.xlu0 %2346 }
 0x7aa   : > { %2440 = vst.msk [vmem:[%s4155_s27 + $0x28] sm:$0xff] %vm2434_vm6, %v2423_v54  ;;  %v2144_v61 = vadd.f32 %v4141_v34, %v2143_v4  ;;  %v3128_v35 = vpop.f32.mrb[58].mxu1 }
 0x7ab   : > { %v2377_v13 = vsel %vm2366_vm2, %v2152_v40, %v4120_v19  ;;  %v2155_v53 = vadd.f32 %v3128_v35, %v4141_v34  ;;  %v2146_v31 = vpop.f32.mrb[59].mxu1  ;;  %v1388_v18 = vpop.xlane.xlu1 %1387 }
 0x7ac   : > { %v2394_v48 = vsel %vm2383_vm3, %v2377_v13, %v3958_v20  ;;  %v2375_v25 = vsel %vm2366_vm2, %v2144_v61, %v4122_v12  ;;  %v2147_v17 = vadd.f32 %v4141_v34, %v2146_v31 }
 0x7ad   : > { %v2411_v45 = vsel %vm2400_vm4, %v2394_v48, %v4001_v15  ;;  %v2392_v62 = vsel %vm2383_vm3, %v2375_v25, %v3946_v24  ;;  %v2378_v19 = vsel %vm2366_vm2, %v2155_v53, %v4124_v32 }
 0x7ae   : > { %v2428_v1 = vsel %vm2417_vm5, %v2411_v45, %v1382_v58  ;;  %v2409_v20 = vsel %vm2400_vm4, %v2392_v62, %v3997_v22  ;;  %v2395_v12 = vsel %vm2383_vm3, %v2378_v19, %v3965_v52  ;;  %v2376_v15 = vsel %vm2366_vm2, %v2147_v17, %v4128_v0 }
 0x7af   : > { %2445 = vst.msk [vmem:[%s4155_s27 + $0x50] sm:$0xff] %vm2434_vm6, %v2428_v1  ;;  %v2426_v24 = vsel %vm2417_vm5, %v2409_v20, %v1376_v41  ;;  %v2412_v32 = vsel %vm2400_vm4, %v2395_v12, %v4003_v2  ;;  %v2393_v58 = vsel %vm2383_vm3, %v2376_v15, %v3949_v42  ;;  %v2349_v63 = vpop.permute.xlu1 %2348 }
 0x7b0   : > { %2443 = vst.msk [vmem:[%s4155_s27 + $0x40] sm:$0xff] %vm2434_vm6, %v2426_v24  ;;  %v2429_v22 = vsel %vm2417_vm5, %v2412_v32, %v4168_v49  ;;  %v2410_v52 = vsel %vm2400_vm4, %v2393_v58, %v3999_v60  ;;  %v3131_v0 = vpop.f32.mrb[60].mxu1 }
 0x7b1   : > { %2446 = vst.msk [vmem:[%s4155_s27 + $0x58] sm:$0xff] %vm2434_vm6, %v2429_v22  ;;  %v2427_v44 = vsel %vm2417_vm5, %v2410_v52, %v1379_v7  ;;  %v2168_v37 = vadd.f32 %v3131_v0, %v4141_v34  ;;  %v2159_v2 = vpop.f32.mrb[61].mxu1 }
 0x7b2   : > { %2444 = vst.msk [vmem:[%s4155_s27 + $0x48] sm:$0xff] %vm2434_vm6, %v2427_v44  ;;  %v2160_v42 = vadd.f32 %v4141_v34, %v2159_v2  ;;  %v3132_v56 = vpop.f32.mrb[62].mxu1 }
 0x7b3   : > { %v2381_v49 = vsel %vm2366_vm2, %v2168_v37, %v4126_v51  ;;  %v2171_v21 = vadd.f32 %v3132_v56, %v4141_v34  ;;  %v2162_v60 = vpop.f32.mrb[63].mxu1 }
 0x7b4   : > { %v2398_v7 = vsel %vm2383_vm3, %v2381_v49, %v3977_v36  ;;  %v2379_v39 = vsel %vm2366_vm2, %v2160_v42, %v4130_v27  ;;  %v2163_v55 = vadd.f32 %v4141_v34, %v2162_v60 }
 0x7b5   : > { %v2415_v30 = vsel %vm2400_vm4, %v2398_v7, %v2347_v3  ;;  %v2396_v43 = vsel %vm2383_vm3, %v2379_v39, %v3969_v33  ;;  %v2382_v51 = vsel %vm2366_vm2, %v2171_v21, %v4132_v5 }
 0x7b6   : > { %v2432_v41 = vsel %vm2417_vm5, %v2415_v30, %v1394_v26  ;;  %v2413_v36 = vsel %vm2400_vm4, %v2396_v43, %v4005_v47  ;;  %v2399_v27 = vsel %vm2383_vm3, %v2382_v51, %v3979_v28  ;;  %v2380_v34 = vsel %vm2366_vm2, %v2163_v55, %v4134_v46 }
 0x7b7   : > { %2449 = vst.msk [vmem:[%s4155_s27 + $0x70] sm:$0xff] %vm2434_vm6, %v2432_v41  ;;  %v2430_v33 = vsel %vm2417_vm5, %v2413_v36, %v1388_v18  ;;  %v2416_v8 = vsel %vm2400_vm4, %v2399_v27, %v2349_v63  ;;  %v2397_v5 = vsel %vm2383_vm3, %v2380_v34, %v3973_v29 }
 0x7b8   : > { %2447 = vst.msk [vmem:[%s4155_s27 + $0x60] sm:$0xff] %vm2434_vm6, %v2430_v33  ;;  %v2433_v47 = vsel %vm2417_vm5, %v2416_v8, %v4224_v16  ;;  %v2414_v28 = vsel %vm2400_vm4, %v2397_v5, %v4328_v38 }
 0x7b9   : > { %2450 = vst.msk [vmem:[%s4155_s27 + $0x78] sm:$0xff] %vm2434_vm6, %v2433_v47  ;;  %v2431_v46 = vsel %vm2417_vm5, %v2414_v28, %v1391_v9 }
 0x7ba   : > { %2448 = vst.msk [vmem:[%s4155_s27 + $0x68] sm:$0xff] %vm2434_vm6, %v2431_v46 }
 0x7bb PF: > { %s13_s12 = sadd.s32 1, %s3248_s12  }
 0x7bc   : > { %p10_p4 = scmp.ge.s32.totalorder %s13_s12, 4  }
 0x7be   :  { %12 = sbr.rel (!%p10_p4) target bundleno = 1 (0x1), region = 76 }

</bundles_post_ra>
